<compile_context>
chip_gen: v6e
topology: v6e:2x2x1
jax: 0.10.0
libtpu: 0.0.40
codegen_flags: <defaults>
</compile_context>

<pallas_src>
import functools
import math

import jax
import jax.numpy as jnp
from jax import lax
from jax.experimental import pallas as pl
from jax.experimental.pallas import tpu as pltpu

NUM_GROUPS = 32
GN_EPS = 1e-5


# ------------- Kernel 1: GroupNorm apply + fused QKV projection -------------
def _gn_qkv_kernel(x_ref, scale_ref, shift_ref, w_ref, b_ref, qkv_ref):
    c = x_ref.shape[1]
    # x tile arrives in native channel-major layout: (C, TS) f32.
    x_ct = x_ref[0]
    # GroupNorm applied in (C, TS) layout (scale/shift are (C, 1)); cast to
    # bf16 BEFORE the transpose so the XLU moves half the vreg traffic.
    xn_ct = (x_ct * scale_ref[0] + shift_ref[0]).astype(jnp.bfloat16)
    xn = jnp.transpose(xn_ct)                                      # (TS, C) bf16
    # One fused (TS, C) x (C, 3C) MXU matmul (f32 accumulation) + bias.
    y = jnp.dot(xn, w_ref[...], preferred_element_type=jnp.float32) + b_ref[...]
    y = y.astype(jnp.bfloat16)                                     # (TS, 3C)
    # q already carries the folded 1/sqrt(C) softmax scale.
    qkv_ref[0, 0] = y[:, :c]
    qkv_ref[0, 1] = y[:, c:2 * c]
    qkv_ref[0, 2] = y[:, 2 * c:]


# --- Kernel 2: flash attention (VMEM-resident K/V) + out-proj + residual ----
def _flash_attn_kernel(q_ref, k_ref, v_ref, xres_ref, wo_ref, bo_ref, o_ref,
                       m_sc, l_sc, acc_sc, *, tk, use_bf16_exp):
    q = q_ref[0, 0]                                  # (TQ, C) bf16 (pre-scaled)
    num_kv = k_ref.shape[2] // tk                    # static

    m_sc[...] = jnp.full(m_sc.shape, -jnp.inf, jnp.float32)
    l_sc[...] = jnp.zeros(l_sc.shape, jnp.float32)
    acc_sc[...] = jnp.zeros(acc_sc.shape, jnp.float32)

    @pl.loop(0, num_kv)
    def _(step):
        off = pl.multiple_of(step * tk, tk)
        k = k_ref[0, 0, pl.ds(off, tk), :]           # (TK, C) bf16, VMEM-resident
        v = v_ref[0, 0, pl.ds(off, tk), :]           # (TK, C) bf16, VMEM-resident
        # scores[t, s] = sum_c q[t, c] * k[s, c] -- contract last dims, no k.T.
        s = lax.dot_general(q, k, (((1,), (1,)), ((), ())),
                            preferred_element_type=jnp.float32)    # (TQ, TK) f32
        m_prev = m_sc[...]
        m_new = jnp.maximum(m_prev, jnp.max(s, axis=-1, keepdims=True))
        alpha = jnp.exp(m_prev - m_new)
        if use_bf16_exp:
            # bf16 EUP exp (v6e/v7x); p feeds the PV matmul directly in bf16.
            p = jnp.exp((s - m_new).astype(jnp.bfloat16))
            p_sum = jnp.sum(p.astype(jnp.float32), axis=-1, keepdims=True)
        else:
            # v5e has no bf16 EUP: keep exp + row-sum in f32.
            p_f32 = jnp.exp(s - m_new)
            p_sum = jnp.sum(p_f32, axis=-1, keepdims=True)
            p = p_f32.astype(jnp.bfloat16)
        l_sc[...] = alpha * l_sc[...] + p_sum
        acc_sc[...] = alpha * acc_sc[...] + jnp.dot(p, v, preferred_element_type=jnp.float32)
        m_sc[...] = m_new

    inv_l = 1.0 / l_sc[...]                          # exact reciprocal (finalize-only)
    attn = (acc_sc[...] * inv_l).astype(jnp.bfloat16)              # (TQ, C)
    # out[c_out, t] = sum_cin wo_t[c_out, c_in] * attn[t, c_in] -> lane-dense (C, TQ)
    out_ct = lax.dot_general(wo_ref[...], attn, (((1,), (1,)), ((), ())),
                             preferred_element_type=jnp.float32)
    o_ref[0] = out_ct + bo_ref[...] + xres_ref[0]    # bias + residual, f32


# ------------------------------- Host wrapper --------------------------------
def _pick_tile(dim, cap):
    """Largest multiple of 128 dividing `dim` that is <= cap; full dim if not 128-aligned."""
    if dim % 128 != 0:
        return dim   # demo-safe fallback; large non-aligned S should be padded by the caller
    t = min(cap, dim)
    t -= t % 128
    t = max(t, 128)
    while dim % t != 0:
        t -= 128
    return t


def _chip_tuning():
    try:
        kind = jax.devices()[0].device_kind.lower()
    except Exception:
        kind = ""
    is_v7 = "v7" in kind
    has_bf16_eup = is_v7 or ("v6" in kind)
    # Leave compiler/internal-scratch headroom: v7x has only 64 MiB physical VMEM.
    vmem_cap = (50 if is_v7 else 100) * 1024 * 1024
    return has_bf16_eup, vmem_cap


def _vmem_limit(working_set_bytes, cap_bytes):
    margin = 8 * 1024 * 1024   # fixed allowance for Mosaic internal scratch
    want = working_set_bytes + working_set_bytes // 2 + margin
    return int(min(max(want, 32 * 1024 * 1024), cap_bytes))


def attention_block(x_nchw, params, *, ts_cap=512, tq_cap=512, tk_cap=512):
    """x_nchw: (N, C, H, W) float32. Returns (N, C, H, W) float32."""
    n, c, h, w = x_nchw.shape
    assert c % NUM_GROUPS == 0, "channels must be divisible by 32 for GroupNorm(32, C)"
    s = h * w

    gamma, beta, wq, bq, wk, bk, wv, bv, wo, bo = params
    use_bf16_exp, vmem_cap = _chip_tuning()

    # Native channel-major layout; pure reshape (no HBM transpose).
    x_ncs = x_nchw.reshape(n, c, s).astype(jnp.float32)

    # ---- GroupNorm statistics (cheap two-pass f32 reduction, left to XLA),
    # folded into per-(n, ch) scale/shift so kernels only do a fused multiply-add.
    xg = x_ncs.reshape(n, NUM_GROUPS, c // NUM_GROUPS, s)
    mean_g = jnp.mean(xg, axis=(2, 3))                                        # (N, G)
    var_g = jnp.mean(jnp.square(xg - mean_g[:, :, None, None]), axis=(2, 3))  # (N, G)
    inv_std_g = lax.rsqrt(var_g + GN_EPS)
    rep = c // NUM_GROUPS
    inv_std_c = jnp.repeat(inv_std_g, rep, axis=1)                            # (N, C)
    mean_c = jnp.repeat(mean_g, rep, axis=1)                                  # (N, C)
    scale_c = (inv_std_c * gamma[None, :]).astype(jnp.float32)                # (N, C)
    shift_c = (beta[None, :] - mean_c * scale_c).astype(jnp.float32)          # (N, C)
    scale_in = scale_c[:, :, None]                                            # (N, C, 1)
    shift_in = shift_c[:, :, None]

    # ---- Parameter prep: fuse QKV weights into one (C, 3C) operand, fold the
    # 1/sqrt(C) softmax scale into the q slice, pre-transpose wo (trans_b dot).
    inv_sqrt_c = 1.0 / math.sqrt(c)
    w_qkv = jnp.concatenate([wq * inv_sqrt_c, wk, wv], axis=1).astype(jnp.bfloat16)   # (C, 3C)
    b_qkv = jnp.concatenate([bq * inv_sqrt_c, bk, bv]).reshape(1, 3 * c).astype(jnp.float32)
    wo_t = jnp.transpose(wo).astype(jnp.bfloat16)                 # (C_out, C_in)
    bo_c = bo.reshape(c, 1).astype(jnp.float32)

    # ================= Kernel 1: normalize + fused QKV projection ================
    ts = _pick_tile(s, ts_cap)
    est1 = (2 * c * ts * 4                       # x tiles (f32, double-buffered)
            + 4 * c * 4                          # GN scale / shift
            + 2 * (c * 3 * c * 2 + 3 * c * 4)    # fused weight (bf16) + bias (f32)
            + 2 * 3 * ts * c * 2                 # qkv output tiles (bf16)
            + 3 * ts * 3 * c * 4)                # in-kernel temporaries headroom
    qkv = pl.pallas_call(
        _gn_qkv_kernel,
        out_shape=jax.ShapeDtypeStruct((n, 3, s, c), jnp.bfloat16),
        grid_spec=pltpu.PrefetchScalarGridSpec(
            num_scalar_prefetch=0,
            grid=(n, s // ts),
            in_specs=[
                pl.BlockSpec((1, c, ts), lambda i, j: (i, 0, j)),   # x tile (C, TS)
                pl.BlockSpec((1, c, 1), lambda i, j: (i, 0, 0)),    # GN scale (C, 1)
                pl.BlockSpec((1, c, 1), lambda i, j: (i, 0, 0)),    # GN shift (C, 1)
                pl.BlockSpec((c, 3 * c), lambda i, j: (0, 0)),      # fused QKV weight (DMA'd once)
                pl.BlockSpec((1, 3 * c), lambda i, j: (0, 0)),      # fused QKV bias
            ],
            out_specs=pl.BlockSpec((1, 3, ts, c), lambda i, j: (i, 0, j, 0)),
        ),
        compiler_params=pltpu.CompilerParams(
            dimension_semantics=("parallel", "parallel"),
            vmem_limit_bytes=_vmem_limit(est1, vmem_cap)),
    )(x_ncs, scale_in, shift_in, w_qkv, b_qkv)

    # ===== Kernel 2: flash attention (resident K/V) + out-proj + residual =====
    # Keep >=2 q tiles when N == 1 so both v7x TensorCores get parallel work.
    tq_cap_eff = tq_cap if n > 1 else min(tq_cap, max(128, s // 2))
    tq = _pick_tile(s, tq_cap_eff)
    tk = _pick_tile(s, tk_cap)
    # NOTE: K/V are VMEM-resident per batch element (fetched once, never
    # re-streamed per q-tile).  For very large S*C where resident K/V would
    # exceed ~1/3 of VMEM, fall back to streaming with a larger TQ instead.
    est2 = (2 * tq * c * 2                       # q tiles (bf16)
            + 2 * 2 * s * c * 2                  # resident K and V (bf16, 2 pipeline buffers each)
            + 2 * c * tq * 4 + 2 * c * tq * 4    # residual in + out tiles (f32)
            + 2 * (c * c * 2 + c * 4)            # wo, bo
            + tq * c * 4 + 2 * tq * 4            # acc, m, l scratch
            + 4 * tq * tk * 4)                   # score / exp temporaries
    kernel2 = functools.partial(_flash_attn_kernel, tk=tk, use_bf16_exp=use_bf16_exp)
    out_ncs = pl.pallas_call(
        kernel2,
        out_shape=jax.ShapeDtypeStruct((n, c, s), jnp.float32),
        grid_spec=pltpu.PrefetchScalarGridSpec(
            num_scalar_prefetch=0,
            grid=(n, s // tq),
            in_specs=[
                pl.BlockSpec((1, 1, tq, c), lambda i, j: (i, 0, j, 0)),  # q tile
                pl.BlockSpec((1, 1, s, c), lambda i, j: (i, 1, 0, 0)),   # K: resident, DMA'd once per sample
                pl.BlockSpec((1, 1, s, c), lambda i, j: (i, 2, 0, 0)),   # V: resident, DMA'd once per sample
                pl.BlockSpec((1, c, tq), lambda i, j: (i, 0, j)),        # residual tile (C, TQ)
                pl.BlockSpec((c, c), lambda i, j: (0, 0)),               # wo^T (DMA'd once)
                pl.BlockSpec((c, 1), lambda i, j: (0, 0)),               # bo
            ],
            out_specs=pl.BlockSpec((1, c, tq), lambda i, j: (i, 0, j)),
            scratch_shapes=[
                pltpu.VMEM((tq, 1), jnp.float32),   # running max m
                pltpu.VMEM((tq, 1), jnp.float32),   # running denom l
                pltpu.VMEM((tq, c), jnp.float32),   # output accumulator
            ],
        ),
        compiler_params=pltpu.CompilerParams(
            dimension_semantics=("parallel", "parallel"),
            vmem_limit_bytes=_vmem_limit(est2, vmem_cap)),
    )(qkv, qkv, qkv, x_ncs, wo_t, bo_c)

    return out_ncs.reshape(n, c, h, w)


# ------------------------------ Reference & init ------------------------------
def reference_attention_block(x, params):
    """Pure-JAX f32 reference matching the PyTorch module semantics."""
    gamma, beta, wq, bq, wk, bk, wv, bv, wo, bo = params
    n, c, h, w = x.shape
    xg = x.reshape(n, NUM_GROUPS, c // NUM_GROUPS, h, w)
    mean = jnp.mean(xg, axis=(2, 3, 4), keepdims=True)
    var = jnp.var(xg, axis=(2, 3, 4), keepdims=True)
    xn = ((xg - mean) / jnp.sqrt(var + GN_EPS)).reshape(n, c, h, w)
    xn = xn * gamma.reshape(1, c, 1, 1) + beta.reshape(1, c, 1, 1)

    t = jnp.transpose(xn.reshape(n, c, h * w), (0, 2, 1))       # (N, S, C)
    q = t @ wq + bq
    k = t @ wk + bk
    v = t @ wv + bv
    scores = (q @ jnp.swapaxes(k, -1, -2)) / jnp.sqrt(jnp.float32(c))
    p = jax.nn.softmax(scores, axis=-1)
    o = (p @ v) @ wo + bo
    o = jnp.transpose(o, (0, 2, 1)).reshape(n, c, h, w)
    return o + x


def make_params(key, c):
    """Weights stored as (in, out): y = x @ W + b.  gamma/beta/biases are (C,)."""
    ks = jax.random.split(key, 10)
    wscale = 1.0 / jnp.sqrt(jnp.float32(c))
    gamma = 1.0 + 0.1 * jax.random.normal(ks[8], (c,), jnp.float32)
    beta = 0.1 * jax.random.normal(ks[9], (c,), jnp.float32)
    wq = jax.random.normal(ks[0], (c, c), jnp.float32) * wscale
    wk = jax.random.normal(ks[1], (c, c), jnp.float32) * wscale
    wv = jax.random.normal(ks[2], (c, c), jnp.float32) * wscale
    wo = jax.random.normal(ks[3], (c, c), jnp.float32) * wscale
    bq = jax.random.normal(ks[4], (c,), jnp.float32) * 0.02
    bk = jax.random.normal(ks[5], (c,), jnp.float32) * 0.02
    bv = jax.random.normal(ks[6], (c,), jnp.float32) * 0.02
    bo = jax.random.normal(ks[7], (c,), jnp.float32) * 0.02
    return (gamma, beta, wq, bq, wk, bk, wv, bv, wo, bo)


if __name__ == "__main__":
    key = jax.random.PRNGKey(0)
    kx, kp = jax.random.split(key)

    # batch=2, channels=64 (divisible by 32 groups), 32x32 spatial -> S=1024:
    # exercises 2 projection tiles, 2 q-tiles x 2 kv-chunks of the flash loop.
    n, c, h, w = 2, 64, 32, 32
    x = jax.random.normal(kx, (n, c, h, w), jnp.float32)
    params = make_params(kp, c)

    out = jax.block_until_ready(attention_block(x, params))
    ref = jax.block_until_ready(reference_attention_block(x, params))

    assert out.shape == x.shape and out.dtype == x.dtype
    max_err = float(jnp.max(jnp.abs(out - ref)))
    # bf16 MXU operands (f32 accumulation) vs f32 reference -> ~1e-2 level agreement.
    assert jnp.allclose(out, ref, atol=5e-2, rtol=5e-2), max_err
    print("KERNEL_OK")
</pallas_src>

<mosaic_0001>
module attributes {stable_mosaic.version = 11 : i64} {
  func.func @_gn_qkv_kernel(%arg0: i32, %arg1: i32, %arg2: memref<1x64x512xf32, #tpu.memory_space<vmem>>, %arg3: memref<1x64x1xf32, #tpu.memory_space<vmem>>, %arg4: memref<1x64x1xf32, #tpu.memory_space<vmem>>, %arg5: memref<64x192xbf16, #tpu.memory_space<vmem>>, %arg6: memref<1x192xf32, #tpu.memory_space<vmem>>, %arg7: memref<1x3x512x64xbf16, #tpu.memory_space<vmem>>) attributes {dimension_semantics = [#tpu.dimension_semantics<parallel>, #tpu.dimension_semantics<parallel>], iteration_bounds = array<i64: 2, 2>, scalar_prefetch = 0 : i64, scratch_operands = 0 : i64, tpu.core_type = #tpu.core_type<tc>, window_params = [{transform_indices = @transform_0, window_bounds = array<i64: 1, 64, 512>}, {transform_indices = @transform_1, window_bounds = array<i64: 1, 64, 1>}, {transform_indices = @transform_2, window_bounds = array<i64: 1, 64, 1>}, {pipeline_mode = #tpu.pipeline_mode<synchronous>, transform_indices = @transform_3, window_bounds = array<i64: 64, 192>}, {pipeline_mode = #tpu.pipeline_mode<synchronous>, transform_indices = @transform_4, window_bounds = array<i64: 1, 192>}, {transform_indices = @transform_5, window_bounds = array<i64: 1, 3, 512, 64>}]} {
    %c0 = arith.constant 0 : index
    %c0_0 = arith.constant 0 : index
    %c0_1 = arith.constant 0 : index
    %0 = vector.load %arg2[%c0, %c0_0, %c0_1] : memref<1x64x512xf32, #tpu.memory_space<vmem>>, vector<1x64x512xf32>
    %1 = vector.shape_cast %0 : vector<1x64x512xf32> to vector<64x512xf32>
    %c0_2 = arith.constant 0 : index
    %c0_3 = arith.constant 0 : index
    %c0_4 = arith.constant 0 : index
    %2 = vector.load %arg3[%c0_2, %c0_3, %c0_4] : memref<1x64x1xf32, #tpu.memory_space<vmem>>, vector<1x64x1xf32>
    %3 = vector.shape_cast %2 : vector<1x64x1xf32> to vector<64x1xf32>
    %4 = vector.broadcast %3 : vector<64x1xf32> to vector<64x512xf32>
    %5 = arith.mulf %1, %4 : vector<64x512xf32>
    %c0_5 = arith.constant 0 : index
    %c0_6 = arith.constant 0 : index
    %c0_7 = arith.constant 0 : index
    %6 = vector.load %arg4[%c0_5, %c0_6, %c0_7] : memref<1x64x1xf32, #tpu.memory_space<vmem>>, vector<1x64x1xf32>
    %7 = vector.shape_cast %6 : vector<1x64x1xf32> to vector<64x1xf32>
    %8 = vector.broadcast %7 : vector<64x1xf32> to vector<64x512xf32>
    %9 = arith.addf %5, %8 : vector<64x512xf32>
    %10 = arith.truncf %9 : vector<64x512xf32> to vector<64x512xbf16>
    %11 = tpu.transpose %10, [1, 0] : vector<64x512xbf16> -> vector<512x64xbf16>
    %c0_8 = arith.constant 0 : index
    %c0_9 = arith.constant 0 : index
    %12 = vector.load %arg5[%c0_8, %c0_9] : memref<64x192xbf16, #tpu.memory_space<vmem>>, vector<64x192xbf16>
    %cst = arith.constant dense<0.000000e+00> : vector<512x192xf32>
    %13 = tpu.matmul %11, %12, %cst {dimension_numbers = #tpu.dot_dimension_numbers<[1], [0], [0], [1], [0, 0, 1, 1], [], []>} : vector<512x64xbf16>, vector<64x192xbf16>, vector<512x192xf32> -> vector<512x192xf32>
    %c0_10 = arith.constant 0 : index
    %c0_11 = arith.constant 0 : index
    %14 = vector.load %arg6[%c0_10, %c0_11] : memref<1x192xf32, #tpu.memory_space<vmem>>, vector<1x192xf32>
    %15 = vector.broadcast %14 : vector<1x192xf32> to vector<512x192xf32>
    %16 = arith.addf %13, %15 : vector<512x192xf32>
    %17 = arith.truncf %16 : vector<512x192xf32> to vector<512x192xbf16>
    %18 = vector.extract_strided_slice %17 {offsets = [0, 0], sizes = [512, 64], strides = [1, 1]} : vector<512x192xbf16> to vector<512x64xbf16>
    %c0_12 = arith.constant 0 : index
    %c0_13 = arith.constant 0 : index
    %c0_14 = arith.constant 0 : index
    %c0_15 = arith.constant 0 : index
    %19 = vector.load %arg7[%c0_12, %c0_13, %c0_14, %c0_15] : memref<1x3x512x64xbf16, #tpu.memory_space<vmem>>, vector<1x1x512x64xbf16>
    %20 = vector.shape_cast %19 : vector<1x1x512x64xbf16> to vector<512x64xbf16>
    %21 = vector.shape_cast %18 : vector<512x64xbf16> to vector<1x1x512x64xbf16>
    tpu.vector_store %arg7[%c0_12, %c0_13, %c0_14, %c0_15], %21 {strides = array<i32>} : memref<1x3x512x64xbf16, #tpu.memory_space<vmem>>, vector<1x1x512x64xbf16>,
    %22 = vector.extract_strided_slice %17 {offsets = [0, 64], sizes = [512, 64], strides = [1, 1]} : vector<512x192xbf16> to vector<512x64xbf16>
    %c0_16 = arith.constant 0 : index
    %c1 = arith.constant 1 : index
    %c0_17 = arith.constant 0 : index
    %c0_18 = arith.constant 0 : index
    %23 = vector.load %arg7[%c0_16, %c1, %c0_17, %c0_18] : memref<1x3x512x64xbf16, #tpu.memory_space<vmem>>, vector<1x1x512x64xbf16>
    %24 = vector.shape_cast %23 : vector<1x1x512x64xbf16> to vector<512x64xbf16>
    %25 = vector.shape_cast %22 : vector<512x64xbf16> to vector<1x1x512x64xbf16>
    tpu.vector_store %arg7[%c0_16, %c1, %c0_17, %c0_18], %25 {strides = array<i32>} : memref<1x3x512x64xbf16, #tpu.memory_space<vmem>>, vector<1x1x512x64xbf16>,
    %26 = vector.extract_strided_slice %17 {offsets = [0, 128], sizes = [512, 64], strides = [1, 1]} : vector<512x192xbf16> to vector<512x64xbf16>
    %c0_19 = arith.constant 0 : index
    %c2 = arith.constant 2 : index
    %c0_20 = arith.constant 0 : index
    %c0_21 = arith.constant 0 : index
    %27 = vector.load %arg7[%c0_19, %c2, %c0_20, %c0_21] : memref<1x3x512x64xbf16, #tpu.memory_space<vmem>>, vector<1x1x512x64xbf16>
    %28 = vector.shape_cast %27 : vector<1x1x512x64xbf16> to vector<512x64xbf16>
    %29 = vector.shape_cast %26 : vector<512x64xbf16> to vector<1x1x512x64xbf16>
    tpu.vector_store %arg7[%c0_19, %c2, %c0_20, %c0_21], %29 {strides = array<i32>} : memref<1x3x512x64xbf16, #tpu.memory_space<vmem>>, vector<1x1x512x64xbf16>,
    return
  }
  func.func @transform_0(%arg0: i32, %arg1: i32) -> (i32, i32, i32) {
    %c0_i32 = arith.constant 0 : i32
    %c0_i32_0 = arith.constant 0 : i32
    return %arg0, %c0_i32, %arg1 : i32, i32, i32
  }
  func.func @transform_1(%arg0: i32, %arg1: i32) -> (i32, i32, i32) {
    %c0_i32 = arith.constant 0 : i32
    %c0_i32_0 = arith.constant 0 : i32
    %c0_i32_1 = arith.constant 0 : i32
    return %arg0, %c0_i32, %c0_i32_0 : i32, i32, i32
  }
  func.func @transform_2(%arg0: i32, %arg1: i32) -> (i32, i32, i32) {
    %c0_i32 = arith.constant 0 : i32
    %c0_i32_0 = arith.constant 0 : i32
    %c0_i32_1 = arith.constant 0 : i32
    return %arg0, %c0_i32, %c0_i32_0 : i32, i32, i32
  }
  func.func @transform_3(%arg0: i32, %arg1: i32) -> (i32, i32) {
    %c0_i32 = arith.constant 0 : i32
    %c0_i32_0 = arith.constant 0 : i32
    %c0_i32_1 = arith.constant 0 : i32
    return %c0_i32, %c0_i32_0 : i32, i32
  }
  func.func @transform_4(%arg0: i32, %arg1: i32) -> (i32, i32) {
    %c0_i32 = arith.constant 0 : i32
    %c0_i32_0 = arith.constant 0 : i32
    %c0_i32_1 = arith.constant 0 : i32
    return %c0_i32, %c0_i32_0 : i32, i32
  }
  func.func @transform_5(%arg0: i32, %arg1: i32) -> (i32, i32, i32, i32) {
    %c0_i32 = arith.constant 0 : i32
    %c0_i32_0 = arith.constant 0 : i32
    %c0_i32_1 = arith.constant 0 : i32
    return %arg0, %c0_i32, %arg1, %c0_i32_0 : i32, i32, i32, i32
  }
}

</mosaic_0001>

<bundles_post_ra>
// kernel: tpu_custom_call.1
= control target key start
LH: loop header
LB: loop body
LE: loop exit
PB: predicated region body
PF: predicated region fallthrough
CT: control target
= control target key end

     0   :  { %s4864_s0 = inlined_call_operand.hbm [shape: f32[2,64,1024], index: 0, kind: input, shape index: {}]   ;;  %s4865_s1 = inlined_call_operand.vmem [shape: f32[2,64,1], index: 1, kind: input, shape index: {}]   ;;  %s4866_s2 = inlined_call_operand.vmem [shape: f32[2,64,1], index: 2, kind: input, shape index: {}]   ;;  %s4867_s3 = inlined_call_operand.hbm [shape: bf16[64,192], index: 3, kind: input, shape index: {}]   ;;  %s4868_s4 = inlined_call_operand.hbm [shape: f32[1,192], index: 4, kind: input, shape index: {}]   ;;  %s4869_s5 = inlined_call_operand.vmem [shape: bf16[2,3,1024,64], index: 5, kind: output, shape index: {}]  }
   0x1   :  { %4876 = sst [smem:[#allocation14_spill]] %s4867_s3 }
   0x2   :  { %4877 = sst [smem:[#allocation15_spill]] %s4868_s4 }
   0x3   :  { %4878 = sst [smem:[#allocation16_spill]] %s4869_s5 }
   0x4   :  { %10 = vsyncpa [#allocation3], 0 }
   0x5   :  { %12 = vsyncpa [#allocation3 + $0x1], 0 }
   0x6   :  { %13 = vsyncpa [#allocation5], 0  ;;  %s3710_s18 = smov 0   ;;  %s3712_s19 = smov 0  }
   0x7   :  { %s3714_s20 = smov 0   ;;  %s3716_s21 = smov 0  }
   0x8   :  { %s3718_s22 = smov 0   ;;  %s3720_s23 = smov 0  }
   0x9   :  { %s3722_s24 = smov 0   ;;  %s3724_s25 = smov 0  }
   0xa LB: > { %4879 = sst [smem:[#allocation10_spill]] %s3652_s21  ;;  %s2947_s26 = sadd.s32 4294967295, %s3668_s25   ;;  %s3668_s25 = sphi %s3724_s25, %s19_s25   ;;  %s3664_s24 = sphi %s3722_s24, %s4906_s24   ;;  %s3660_s23 = sphi %s3720_s23, %s4905_s23   ;;  %s3656_s22 = sphi %s3718_s22, %s4904_s22   ;;  %s3652_s21 = sphi %s3716_s21, %s4899_s21   ;;  %s3648_s20 = sphi %s3714_s20, %s4903_s20   ;;  %s3644_s19 = sphi %s3712_s19, %s4902_s19   ;;  %s3640_s18 = sphi %s3710_s18, %s4901_s18  }
   0xb   : > { %4880 = sst [smem:[#allocation11_spill]] %s3660_s23  ;;  %p47_p0 = scmp.ne.s32.totalorder %s3648_s20, %s3644_s19 }
   0xc   : > { %4881 = sst [smem:[#allocation12_spill]] %s3668_s25  ;;  %p48_p1 = scmp.eq.s32.totalorder %s3668_s25, 0 }
   0xd   : > { %p53_p2 = scmp.ne.s32.totalorder %s3644_s19, %s3640_s18  ;;  %p3754_p3 = scmp.eq.s32.totalorder %s2947_s26, 0 }
   0xe   : > { %p3758_p4 = por %p48_p1, %p47_p0  ;;  %p173_p5 = scmp.eq.s32.totalorder %s2947_s26, 3 }
   0xf   : > { %s4882_s28 = scalar_select %p3754_p3, 1, 0 }
  0x10   : > { %p3764_p6 = por %p3754_p3, %p53_p2  ;;  %p2949_p7 = scmp.ge.s32.totalorder %s3668_s25, 1 }
  0x11   : > { %p3769_p8 = por %p173_p5, %p47_p0  ;;  %p186_p9 = scmp.lt.s32.totalorder %s3668_s25, 5 }
  0x12   : > { %s4884_s30 = scalar_select %p3764_p6, 1, 0 }
  0x13   : > { %s4885_s6 = scalar_select %p3769_p8, 1, 0 }
  0x14   : > { %p3774_p10 = pnand %p2949_p7, %p186_p9  ;;  %s3670_s8 = smov [#allocation4]  }
  0x15   : > { %s198_s9 = sshll.u32 %s3670_s8, 4  ;;  %p3428_p12 = scmp.lt.s32.totalorder %s3668_s25, 4  ;;  %s199_s9 = int_to_ptr.vmem [resolvable:$true] %s198_s9 }
  0x16   : > { %p3415_p11 = pneg %p3774_p10  ;;  %s3671_s12 = smov [#allocation6]  }
  0x17   : > { %p3789_p0 = pnand %p3428_p12, %p3758_p4  ;;  %s212_s13 = sshll.u32 %s3671_s12, 4  ;;  %s213_s13 = int_to_ptr.vmem [resolvable:$true] %s212_s13 }
  0x18   : > { %p3783_p13 = pnand %p3415_p11, %p3754_p3  ;;  %s3529_s14 = scalar_lea.vmem %s199_s9, 1024 }
  0x19   : > { %p3530_p2 = scmp.ne.s32.totalorder %s199_s9, %s3529_s14  ;;  %p3537_p9 = scmp.lt.s32.totalorder %s199_s9, %s199_s9 }
  0x1a   : > { %p3520_p1 = pneg %p3783_p13  ;;  %p3538_p11 = scmp.lt.s32.totalorder %s3529_s14, %s3529_s14 }
  0x1c   : > { %p3532_p5 = pnand %p3530_p2, %p3520_p1  ;;  %p3539_p8 = por %p3538_p11, %p3537_p9 }
  0x1e   : > { %p3533_p7 = pneg %p3532_p5 }
  0x20   : > { %p3540_p3 = pnand %p3539_p8, %p3533_p7 }
  0x22   : > { %3543 = shalt.err (!%p3540_p3)
}
  0x23   : > { %s3672_s15 = smov 128   ;;  %s3673_s16 = smov 8  }
  0x24   : > { %s4889_s3 = sld [smem:[#allocation14_spill]]  ;;  %s3555_s26 = scalar_lea.vmem %s213_s13, 32 }
  0x25   : > { %p3556_p4 = scmp.ne.s32.totalorder %s213_s13, %s3555_s26  ;;  %p3563_p5 = scmp.lt.s32.totalorder %s213_s13, %s213_s13 }
  0x26   : > { %p3564_p6 = scmp.lt.s32.totalorder %s3555_s26, %s3555_s26 }
  0x27   : > { %p3558_p12 = pnand %p3556_p4, %p3520_p1 }
  0x28   : > { %p3565_p9 = por %p3564_p6, %p3563_p5 }
  0x29   : > { %p3559_p2 = pneg %p3558_p12 }
  0x2a   : > { %3418 = dma.hbm_to_vmem [thread:$0]  (!%p3783_p13), %s4889_s3, 1024, %s199_s9, [#allocation5], %s3672_s15, %s3672_s15, %s3673_s16  }
  0x2b   : > { %p3566_p8 = pnand %p3565_p9, %p3559_p2 }
  0x2d   : > { %3569 = shalt.err (!%p3566_p8)
}
  0x2e   : > { %s4890_s4 = sld [smem:[#allocation15_spill]]  ;;  %s28_s9 = sadd.s32 1, %s3660_s23 }
  0x2f   : > { %p29_p3 = scmp.ge.s32.totalorder %s28_s9, 2  ;;  %s31_s12 = sadd.s32 1, %s3664_s24 }
  0x30   : > { %s223_s14 = sand.u32 1, %s3648_s20   ;;  %s2954_s15 = sshll.u32 %s3660_s23, 2 }
  0x31   : > { %s4908_s9 = smov (%p29_p3, %s28_s9), 0  ;;  %s4910_s12 = smov (!%p29_p3, %s31_s12), %s3664_s24 }
  0x32   : > { %4891 = sst [smem:[#allocation13_spill]] %s4908_s9  ;;  %s36_s10 = ssub.s32 %s3660_s23, %s4908_s9 }
  0x33   : > { %p33_p6 = scmp.ge.s32.totalorder %s4910_s12, 2  ;;  %s2953_s16 = sshll.u32 %s223_s14, 8 }
  0x34   : > { %3421 = dma.hbm_to_vmem [thread:$0]  (!%p3783_p13), %s4890_s4, 32, %s213_s13, [#allocation5]  }
  0x35   : > { %s2955_s17 = sshll.u32 %s3664_s24, 6  ;;  %s4912_s12 = smov (%p33_p6, %s4910_s12), 0 }
  0x36   : > { %s233_s13 = sadd.s32 %s2955_s17, %s2954_s15  ;;  %s227_s18 = scalar_lea.vmem [#allocation2], %s2953_s16 }
  0x37   : > { %s236_s26 = sshll.u32 %s227_s18, 4  ;;  %s35_s29 = ssub.s32 %s3664_s24, %s4912_s12  ;;  %s237_s26 = int_to_ptr.vmem [resolvable:$true] %s236_s26 }
  0x38   : > { %s2956_s8 = sshll.u32 %s233_s13, 7  ;;  %s37_s27 = sor.u32 %s36_s10, %s35_s29 }
  0x39   : > { %s235_s25 = scalar_lea.hbm %s4864_s0, %s2956_s8  ;;  %p38_p13 = scmp.eq.s32.totalorder %s37_s27, 0 }
  0x3a   : > { %s4892_s9 = sadd.s32 1, %s3648_s20  ;;  %s224_s5 = scalar_lea.sflag [#allocation3], %s223_s14 }
  0x3b   : > { %s3831_s23 = scalar_select %p38_p13, %s3648_s20, %s4892_s9  }
  0x3c   : > { %p3572_p1 = pneg %p3789_p0  ;;  %s3583_s21 = scalar_lea.vmem %s237_s26, 4096 }
  0x3d   : > { %p3584_p7 = scmp.ne.s32.totalorder %s237_s26, %s3583_s21  ;;  %s3674_s15 = smov [#allocation2]  }
  0x3e   : > { %s3588_s16 = sshll.u32 %s3674_s15, 4  ;;  %s3589_s16 = int_to_ptr.vmem [resolvable:$false] %s3588_s16 }
  0x3f   : > { %p3586_p11 = pnand %p3584_p7, %p3572_p1  ;;  %s3590_s10 = scalar_lea.vmem %s3589_s16, 8192 }
  0x40   : > { %p3591_p12 = scmp.lt.s32.totalorder %s237_s26, %s3589_s16  ;;  %p3592_p2 = scmp.lt.s32.totalorder %s3590_s10, %s3583_s21 }
  0x41   : > { %p3587_p4 = pneg %p3586_p11 }
  0x42   : > { %p3593_p5 = por %p3592_p2, %p3591_p12 }
  0x44   : > { %p3594_p9 = pnand %p3593_p5, %p3587_p4 }
  0x46   : > { %3597 = shalt.err (!%p3594_p9)
}
  0x47   : > { %s3675_s3 = smov 1024   ;;  %s3676_s4 = smov 512  }
  0x48   : > { %s3677_s27 = smov 32   ;;  %264 = sbr.rel (%p3774_p10) target bundleno = 781 (0x30d), region = 40 }
  0x49   : > { %3425 = dma.hbm_to_vmem [thread:$0]  (!%p3789_p0), %s235_s25, 4096, %s237_s26, %s224_s5, %s3675_s3, %s3676_s4, %s3677_s27  }
  0x4a   : > { %s3840_s9 = sand.u32 (!%p3774_p10), 1, %s3644_s19   ;;  %p4893_p8 = scmp.ne.s32.totalorder (!%p3774_p10), %s4884_s30, 0 }
  0x4b   : > { %s2958_s14 = sshll.u32 (!%p3774_p10), %s3840_s9, 8  ;;  %s267_s21 = scalar_lea.sflag (!%p3774_p10), [#allocation3], %s3840_s9 }
  0x4c   : > { %s3844_s17 = scalar_lea.vmem (!%p3774_p10), [#allocation2], %s2958_s14 }
  0x4d   : > { %3631 = dma.done.wait (%p4893_p8), %s267_s21, 4096  }
  0x4e   : > { %3633 = vsyncadd (%p4893_p8), %s267_s21, 4294963200  ;;  %p4894_p0 = scmp.ne.s32.totalorder %s4882_s28, 0 }
  0x50   : > { %3635 = dma.done.wait (%p4894_p0), [#allocation5], 1056  }
  0x51   : > { %3637 = vsyncadd (%p4894_p0), [#allocation5], 4294966240  ;;  %p315_p10 = scmp.lt.s32.totalorder %s3656_s22, 1  ;;  %v3678_v0 = vmov 0   ;;  %v3506_v17 = vld [vmem:[#allocation4 + $0x34] ss:$8 sps:$4 sm:$0xff]  }
  0x52   : > { %3505 = vset.pattern.permute.xlu1 %v3678_v0  ;;  %3504 = vset.pattern.permute.xlu0 %v3678_v0  ;;  %v3508_v18 = vld [vmem:[#allocation4 + $0x30] ss:$8 sps:$4 sm:$0xff]   ;;  %v3509_v19 = vld [vmem:[#allocation4 + $0x24] ss:$8 sps:$4 sm:$0xff]   ;;  %v3511_v20 = vld [vmem:[#allocation4 + $0x20] ss:$8 sps:$4 sm:$0xff]  }
  0x53   : > { %s316_s5 = scalar_select %p315_p10, %s3656_s22, 1  ;;  %788 = vmatprep.mubr.bf16.mxu0 %v3678_v0  ;;  %948 = vmatprep.mubr.bf16.mxu1 %v3678_v0  ;;  %v3512_v21 = vld [vmem:[#allocation4 + $0x14] ss:$8 sps:$4 sm:$0xff]   ;;  %v3514_v22 = vld [vmem:[#allocation4 + $0x10] ss:$8 sps:$4 sm:$0xff]   ;;  %v327_v31 = vld [vmem:[%s3844_s17] sm:$0xff] }
  0x54   : > { %764 = vmatprep.subr.bf16.mxu0 %v3506_v17  ;;  %3395 = vmatprep.subr.bf16.mxu1 %v3506_v17  ;;  %v3515_v23 = vld [vmem:[#allocation4 + $0x4] ss:$8 sps:$4 sm:$0xff]   ;;  %v3517_v24 = vld [vmem:[#allocation4] ss:$8 sps:$4 sm:$0xff]   ;;  %v329_v27 = vld [vmem:[%s3844_s17 + $0x10] sm:$0xff]  ;;  %vm659_vm0 = vcmask 523264  }
  0x55   : > { %s3265_s25 = sshll.u32 %s316_s5, 6  ;;  %765 = vmatpush1.bf16.msra.mxu0 %v3508_v18  ;;  %3399 = vmatpush1.bf16.msra.mxu1 %v3508_v18  ;;  %v333_v30 = vld [vmem:[%s3844_s17 + $0x30] sm:$0xff]  ;;  %v331_v32 = vld [vmem:[%s3844_s17 + $0x20] sm:$0xff]  ;;  %s3403_s26 = smul.u32 768, %s3840_s9  ;;  %vm1397_vm1 = vcmask 519168  }
  0x56   : > { %s319_s11 = scalar_lea.vmem %s4865_s1, %s3265_s25  ;;  %s324_s18 = scalar_lea.vmem %s4866_s2, %s3265_s25  ;;  %766 = vmatprep.subr.bf16.mxu0 %v3509_v19  ;;  %3396 = vmatprep.subr.bf16.mxu1 %v3509_v19  ;;  %v339_v45 = vld [vmem:[%s3844_s17 + $0x60] sm:$0xff]  ;;  %v341_v46 = vld [vmem:[%s3844_s17 + $0x70] sm:$0xff] }
  0x57   : > { %v361_v1 = vld [vmem:[%s319_s11 + $0x10] sm:$0xff]  ;;  %v359_v2 = vld [vmem:[%s319_s11] sm:$0xff]  ;;  %v362_v3 = vld [vmem:[%s319_s11 + $0x18] sm:$0xff]  ;;  %s4065_s29 = scalar_lea.vmem [#allocation7], %s3403_s26  ;;  %s3679_s8 = smov 64  }
  0x58   : > { %379 = vperm.xlu1 %3505, %v361_v1   ;;  %369 = vperm.xlu0 %3504, %v359_v2   ;;  %v360_v4 = vld [vmem:[%s319_s11 + $0x8] sm:$0xff]  ;;  %v439_v6 = vld [vmem:[%s324_s18] sm:$0xff]  ;;  %v442_v9 = vld [vmem:[%s324_s18 + $0x18] sm:$0xff]  ;;  %p4895_p3 = scmp.ne.s32.totalorder %s4885_s6, 0 }
  0x59   : > { %v440_v5 = vld [vmem:[%s324_s18 + $0x8] sm:$0xff]  ;;  %v363_v8 = vld [vmem:[%s319_s11 + $0x20] sm:$0xff]  ;;  %v441_v10 = vld [vmem:[%s324_s18 + $0x10] sm:$0xff]  ;;  %767 = vmatpush1.bf16.msra.mxu0 %v3511_v20  ;;  %3400 = vmatpush1.bf16.msra.mxu1 %v3511_v20  ;;  %s4896_s15 = sld [smem:[#allocation10_spill]] (%p4895_p3)  ;;  %s3404_s10 = smul.u32 (%p4895_p3), 384, %s3656_s22 }
  0x5a   : > { %v364_v7 = vld [vmem:[%s319_s11 + $0x28] sm:$0xff]  ;;  %v366_v11 = vld [vmem:[%s319_s11 + $0x38] sm:$0xff]  ;;  %v365_v12 = vld [vmem:[%s319_s11 + $0x30] sm:$0xff]  ;;  %768 = vmatprep.subr.bf16.mxu0 %v3512_v21  ;;  %3397 = vmatprep.subr.bf16.mxu1 %v3512_v21  ;;  %s4897_s22 = sld [smem:[#allocation16_spill]] (%p4895_p3) }
  0x5b   : > { %v444_v13 = vld [vmem:[%s324_s18 + $0x28] sm:$0xff]  ;;  %v443_v14 = vld [vmem:[%s324_s18 + $0x20] sm:$0xff]  ;;  %v446_v15 = vld [vmem:[%s324_s18 + $0x38] sm:$0xff] }
  0x5c   : > { %384 = vperm.xlu1 %3505, %v362_v3   ;;  %374 = vperm.xlu0 %3504, %v360_v4   ;;  %v445_v16 = vld [vmem:[%s324_s18 + $0x30] sm:$0xff]  ;;  %v335_v49 = vld [vmem:[%s3844_s17 + $0x40] sm:$0xff] }
  0x5d   : > { %769 = vmatpush1.bf16.msra.mxu0 %v3514_v22  ;;  %3401 = vmatpush1.bf16.msra.mxu1 %v3514_v22  ;;  %v337_v50 = vld [vmem:[%s3844_s17 + $0x50] sm:$0xff]  ;;  %v347_v61 = vld [vmem:[%s3844_s17 + $0xa0] sm:$0xff] }
  0x5e   : > { %770 = vmatprep.subr.bf16.mxu0 %v3515_v23  ;;  %3398 = vmatprep.subr.bf16.mxu1 %v3515_v23  ;;  %v349_v62 = vld [vmem:[%s3844_s17 + $0xb0] sm:$0xff]  ;;  %v343_v4 = vld [vmem:[%s3844_s17 + $0x80] sm:$0xff] }
  0x5f   : > { %v353_v17 = vld [vmem:[%s3844_s17 + $0xd0] sm:$0xff]  ;;  %s3261_s16 = sshll.u32 (%p4895_p3), %s4896_s15, 6 }
  0x60   : > { %454 = vperm.xlu1 %3505, %v440_v5   ;;  %449 = vperm.xlu0 %3504, %v439_v6   ;;  %v345_v5 = vld [vmem:[%s3844_s17 + $0x90] sm:$0xff]  ;;  %s2017_s6 = sadd.s32 (%p4895_p3), %s3404_s10, %s3261_s16 }
  0x61   : > { %771 = vmatpush1.bf16.msra.mxu0 %v3517_v24  ;;  %3402 = vmatpush1.bf16.msra.mxu1 %v3517_v24  ;;  %s3262_s3 = sshll.u32 (%p4895_p3), %s2017_s6, 2 }
  0x62   : > { %s4658_s9 = scalar_lea.vmem (%p4895_p3), %s4897_s22, %s3262_s3 }
  0x64   : > { %394 = vperm.xlu1 %3505, %v364_v7   ;;  %389 = vperm.xlu0 %3504, %v363_v8  }
  0x68   : > { %464 = vperm.xlu1 %3505, %v442_v9   ;;  %459 = vperm.xlu0 %3504, %v441_v10  }
  0x6c   : > { %404 = vperm.xlu1 %3505, %v366_v11   ;;  %399 = vperm.xlu0 %3504, %v365_v12   ;;  %v355_v12 = vld [vmem:[%s3844_s17 + $0xe0] sm:$0xff] }
  0x70   : > { %474 = vperm.xlu1 %3505, %v444_v13   ;;  %469 = vperm.xlu0 %3504, %v443_v14   ;;  %v357_v13 = vld [vmem:[%s3844_s17 + $0xf0] sm:$0xff] }
  0x74   : > { %484 = vperm.xlu1 %3505, %v446_v15   ;;  %479 = vperm.xlu0 %3504, %v445_v16   ;;  %v351_v16 = vld [vmem:[%s3844_s17 + $0xc0] sm:$0xff] }
  0xd3   : > { %v3866_v25 = vpop.permute.xlu1 %379  ;;  %v3868_v26 = vpop.permute.xlu0 %369 }
  0xd4   : > { %v409_v33 = vmul.f32 %v3868_v26, %v329_v27  ;;  %v407_v35 = vmul.f32 %v3868_v26, %v327_v31  ;;  %v415_v53 = vmul.f32 %v3866_v25, %v335_v49  ;;  %v417_v54 = vmul.f32 %v3866_v25, %v337_v50  ;;  %v342_v49 = vld [vmem:[%s3844_s17 + $0x78] sm:$0xff] }
  0xd7   : > { %v3871_v28 = vpop.permute.xlu1 %384  ;;  %v3873_v29 = vpop.permute.xlu0 %374 }
  0xd8   : > { %v413_v34 = vmul.f32 %v3873_v29, %v333_v30  ;;  %v411_v36 = vmul.f32 %v3873_v29, %v331_v32  ;;  %v419_v51 = vmul.f32 %v3871_v28, %v339_v45  ;;  %v421_v52 = vmul.f32 %v3871_v28, %v341_v46  ;;  %v338_v46 = vld [vmem:[%s3844_s17 + $0x58] sm:$0xff] }
  0xdb   : > { %v3882_v37 = vpop.permute.xlu1 %454  ;;  %v3884_v38 = vpop.permute.xlu0 %449 }
  0xdc   : > { %v489_v39 = vadd.f32 %v3884_v38, %v409_v33  ;;  %v493_v40 = vadd.f32 %v3882_v37, %v413_v34  ;;  %v487_v41 = vadd.f32 %v3884_v38, %v407_v35  ;;  %v491_v42 = vadd.f32 %v3882_v37, %v411_v36 }
  0xde   : > { %v521_v43 = vpack.c.bf16 %v493_v40, %v489_v39  ;;  %v519_v44 = vpack.c.bf16 %v491_v42, %v487_v41  ;;  %v330_v40 = vld [vmem:[%s3844_s17 + $0x18] sm:$0xff]  ;;  %v328_v42 = vld [vmem:[%s3844_s17 + $0x8] sm:$0xff] }
  0xdf   : > { %v3892_v47 = vpop.permute.xlu1 %394  ;;  %v3894_v48 = vpop.permute.xlu0 %389  ;;  %v334_v41 = vld [vmem:[%s3844_s17 + $0x38] sm:$0xff]  ;;  %v408_v50 = vmul.f32 %v3868_v26, %v328_v42 }
  0xe0   : > { %567 = vxpose.xlu1.c.b16.start [1/4] (short) %v521_v43, 128  ;;  %535 = vxpose.xlu0.c.b16.start [1/4] (short) %v519_v44, 128  ;;  %v427_v6 = vmul.f32 %v3892_v47, %v347_v61  ;;  %v429_v7 = vmul.f32 %v3892_v47, %v349_v62  ;;  %v423_v8 = vmul.f32 %v3894_v48, %v343_v4  ;;  %v332_v43 = vld [vmem:[%s3844_s17 + $0x28] sm:$0xff] }
  0xe1   : > { %v425_v9 = vmul.f32 %v3894_v48, %v345_v5  ;;  %v410_v44 = vmul.f32 %v3868_v26, %v330_v40  ;;  %v414_v45 = vmul.f32 %v3873_v29, %v334_v41  ;;  %v422_v61 = vmul.f32 %v3871_v28, %v342_v49  ;;  %v344_v4 = vld [vmem:[%s3844_s17 + $0x88] sm:$0xff] }
  0xe3   : > { %v3902_v55 = vpop.permute.xlu1 %464  ;;  %v3904_v56 = vpop.permute.xlu0 %459 }
  0xe4   : > { %v499_v57 = vadd.f32 %v3902_v55, %v419_v51  ;;  %v501_v58 = vadd.f32 %v3902_v55, %v421_v52  ;;  %v495_v59 = vadd.f32 %v3904_v56, %v415_v53  ;;  %v497_v60 = vadd.f32 %v3904_v56, %v417_v54  ;;  %v336_v52 = vld [vmem:[%s3844_s17 + $0x48] sm:$0xff] }
  0xe5   : > { %v412_v51 = vmul.f32 %v3873_v29, %v332_v43  ;;  %v340_v53 = vld [vmem:[%s3844_s17 + $0x68] sm:$0xff]  ;;  %v490_v54 = vadd.f32 %v3884_v38, %v410_v44  ;;  %v416_v62 = vmul.f32 %v3866_v25, %v336_v52  ;;  %v350_v29 = vld [vmem:[%s3844_s17 + $0xb8] sm:$0xff]  ;;  %v502_v5 = vadd.f32 %v3902_v55, %v422_v61 }
  0xe6   : > { %v525_v2 = vpack.c.bf16 %v501_v58, %v497_v60  ;;  %v523_v3 = vpack.c.bf16 %v499_v57, %v495_v59  ;;  %v494_v57 = vadd.f32 %v3882_v37, %v414_v45  ;;  %v488_v58 = vadd.f32 %v3884_v38, %v408_v50 }
  0xe7   : > { %v3912_v63 = vpop.permute.xlu1 %404  ;;  %v3914_v1 = vpop.permute.xlu0 %399  ;;  %v492_v59 = vadd.f32 %v3882_v37, %v412_v51  ;;  %v418_v60 = vmul.f32 %v3866_v25, %v338_v46  ;;  %v420_v26 = vmul.f32 %v3871_v28, %v340_v53  ;;  %v430_v28 = vmul.f32 %v3892_v47, %v350_v29 }
  0xe8   : > { %568 = vxpose.xlu1.c.b16.cont [2/4] (short) %v525_v2, 128  ;;  %536 = vxpose.xlu0.c.b16.cont [2/4] (short) %v523_v3, 128  ;;  %v435_v20 = vmul.f32 %v3912_v63, %v355_v12  ;;  %v437_v21 = vmul.f32 %v3912_v63, %v357_v13  ;;  %v431_v24 = vmul.f32 %v3914_v1, %v351_v16  ;;  %v346_v2 = vld [vmem:[%s3844_s17 + $0x98] sm:$0xff]  ;;  %v348_v3 = vld [vmem:[%s3844_s17 + $0xa8] sm:$0xff] }
  0xe9   : > { %v433_v27 = vmul.f32 %v3914_v1, %v353_v17  ;;  %v498_v38 = vadd.f32 %v3904_v56, %v418_v60  ;;  %v522_v37 = vpack.c.bf16 %v494_v57, %v490_v54  ;;  %v520_v25 = vpack.c.bf16 %v492_v59, %v488_v58  ;;  %v358_v13 = vld [vmem:[%s3844_s17 + $0xf8] sm:$0xff]  ;;  %v352_v17 = vld [vmem:[%s3844_s17 + $0xc8] sm:$0xff] }
  0xea   : > { %v424_v12 = vmul.f32 %v3894_v48, %v344_v4 }
  0xeb   : > { %v3922_v10 = vpop.permute.xlu1 %474  ;;  %v3924_v11 = vpop.permute.xlu0 %469 }
  0xec   : > { %v507_v14 = vadd.f32 %v3922_v10, %v427_v6  ;;  %v509_v15 = vadd.f32 %v3922_v10, %v429_v7  ;;  %v503_v18 = vadd.f32 %v3924_v11, %v423_v8  ;;  %v505_v19 = vadd.f32 %v3924_v11, %v425_v9 }
  0xed   : > { %v500_v6 = vadd.f32 %v3902_v55, %v420_v26  ;;  %v496_v7 = vadd.f32 %v3904_v56, %v416_v62  ;;  %v426_v8 = vmul.f32 %v3894_v48, %v346_v2  ;;  %v428_v9 = vmul.f32 %v3892_v47, %v348_v3  ;;  %v356_v55 = vld [vmem:[%s3844_s17 + $0xe8] sm:$0xff] }
  0xee   : > { %v529_v30 = vpack.c.bf16 %v509_v15, %v505_v19  ;;  %v527_v31 = vpack.c.bf16 %v507_v14, %v503_v18  ;;  %v354_v14 = vld [vmem:[%s3844_s17 + $0xd8] sm:$0xff]  ;;  %v510_v15 = vadd.f32 %v3922_v10, %v430_v28  ;;  %v526_v56 = vpack.c.bf16 %v502_v5, %v498_v38 }
  0xef   : > { %v3936_v22 = vpop.permute.xlu1 %484  ;;  %v3938_v23 = vpop.permute.xlu0 %479  ;;  %v506_v16 = vadd.f32 %v3924_v11, %v426_v8  ;;  %v508_v18 = vadd.f32 %v3922_v10, %v428_v9  ;;  %v504_v19 = vadd.f32 %v3924_v11, %v424_v12  ;;  %v434_v47 = vmul.f32 %v3914_v1, %v354_v14 }
  0xf0   : > { %v515_v32 = vadd.f32 %v3936_v22, %v435_v20  ;;  %v517_v33 = vadd.f32 %v3936_v22, %v437_v21  ;;  %v511_v34 = vadd.f32 %v3938_v23, %v431_v24  ;;  %v513_v35 = vadd.f32 %v3938_v23, %v433_v27  ;;  %569 = vxpose.xlu1.c.b16.cont [3/4] (short) %v529_v30, 128 }
  0xf1   : > { %537 = vxpose.xlu0.c.b16.cont [3/4] (short) %v527_v31, 128  ;;  %v524_v20 = vpack.c.bf16 %v500_v6, %v496_v7  ;;  %v438_v21 = vmul.f32 %v3912_v63, %v358_v13  ;;  %v436_v48 = vmul.f32 %v3912_v63, %v356_v55  ;;  %v432_v24 = vmul.f32 %v3914_v1, %v352_v17  ;;  %v607_v7 = vld [vmem:[#allocation6] sm:$0x3] }
  0xf2   : > { %v533_v36 = vpack.c.bf16 %v517_v33, %v513_v35  ;;  %v531_v39 = vpack.c.bf16 %v515_v32, %v511_v34  ;;  %v514_v30 = vadd.f32 %v3938_v23, %v434_v47  ;;  %v530_v31 = vpack.c.bf16 %v510_v15, %v506_v16 }
  0xf3   : > { %v518_v27 = vadd.f32 %v3936_v22, %v438_v21  ;;  %v516_v10 = vadd.f32 %v3936_v22, %v436_v48  ;;  %v512_v11 = vadd.f32 %v3938_v23, %v432_v24  ;;  %v528_v32 = vpack.c.bf16 %v508_v18, %v504_v19 }
  0xf4   : > { %570 = vxpose.xlu1.c.b16.end [4/4] (short) %v533_v36, 128  ;;  %v609_v38 = vlaneseq }
  0xf5   : > { %538 = vxpose.xlu0.c.b16.end [4/4] (short) %v531_v39, 128  ;;  %v534_v33 = vpack.c.bf16 %v518_v27, %v514_v30  ;;  %v532_v34 = vpack.c.bf16 %v516_v10, %v512_v11 }
 0x105   : > { %583 = vxpose.xlu1.c.b16.start [1/4] (short) %v522_v37, 128  ;;  %v610_v37 = vshrl.u32 %v609_v38, 7 }
 0x106   : > { %551 = vxpose.xlu0.c.b16.start [1/4] (short) %v520_v25, 128 }
 0x107   : > { %v611_v6 = vsub.s32 0, %v610_v37  ;;  %v615_v25 = vsub.s32 1, %v610_v37 }
 0x109   : > { %584 = vxpose.xlu1.c.b16.cont [2/4] (short) %v526_v56, 128  ;;  %v4056_v28 = vrot.slane %v607_v7, %v611_v6  ;;  %v4059_v9 = vrot.slane %v607_v7, %v615_v25 }
 0x10a   : > { %552 = vxpose.xlu0.c.b16.cont [2/4] (short) %v524_v20, 128 }
 0x10d   : > { %585 = vxpose.xlu1.c.b16.cont [3/4] (short) %v530_v31, 128 }
 0x10e   : > { %553 = vxpose.xlu0.c.b16.cont [3/4] (short) %v528_v32, 128 }
 0x111   : > { %586 = vxpose.xlu1.c.b16.end [4/4] (short) %v534_v33, 128 }
 0x112   : > { %554 = vxpose.xlu0.c.b16.end [4/4] (short) %v532_v34, 128 }
 0x14a   : > { %v575_v63 = vpop.trf.xlu1 }
 0x14b   : > { %v543_v1 = vpop.trf.xlu0  ;;  %2989 = vmatmul.mubr.msk.bf16.vlgmr.msra.gmra.mxu1 %vm659_vm0, %v575_v63 }
 0x14c   : > { %2973 = vmatmul.mubr.msk.bf16.vlgmr.msra.gmra.mxu0 %vm659_vm0, %v543_v1  ;;  %958 = vmatprep.mubr.bf16.mxu1 %v3678_v0 }
 0x14d   : > { %798 = vmatprep.mubr.bf16.mxu0 %v3678_v0 }
 0x14e   : > { %v576_v22 = vpop.trf.xlu1 }
 0x14f   : > { %v544_v23 = vpop.trf.xlu0 }
 0x152   : > { %v577_v35 = vpop.trf.xlu1 }
 0x153   : > { %2990 = vmatmul.mubr.msk.bf16.gmra.mxu1 %vm659_vm0, %v576_v22  ;;  %v545_v36 = vpop.trf.xlu0 }
 0x154   : > { %2974 = vmatmul.mubr.msk.bf16.gmra.mxu0 %vm659_vm0, %v544_v23  ;;  %968 = vmatprep.mubr.bf16.mxu1 %v3678_v0 }
 0x155   : > { %808 = vmatprep.mubr.bf16.mxu0 %v3678_v0 }
 0x156   : > { %v578_v39 = vpop.trf.xlu1 }
 0x157   : > { %v546_v40 = vpop.trf.xlu0 }
 0x15a   : > { %v579_v41 = vpop.trf.xlu1 }
 0x15b   : > { %2991 = vmatmul.mubr.msk.bf16.gmra.mxu1 %vm659_vm0, %v577_v35  ;;  %v547_v42 = vpop.trf.xlu0 }
 0x15c   : > { %2975 = vmatmul.mubr.msk.bf16.gmra.mxu0 %vm659_vm0, %v545_v36  ;;  %978 = vmatprep.mubr.bf16.mxu1 %v3678_v0 }
 0x15d   : > { %818 = vmatprep.mubr.bf16.mxu0 %v3678_v0 }
 0x15e   : > { %v580_v43 = vpop.trf.xlu1 }
 0x15f   : > { %v548_v44 = vpop.trf.xlu0 }
 0x162   : > { %v581_v45 = vpop.trf.xlu1 }
 0x163   : > { %2992 = vmatmul.mubr.msk.bf16.gmra.mxu1 %vm659_vm0, %v578_v39  ;;  %v549_v46 = vpop.trf.xlu0 }
 0x164   : > { %2976 = vmatmul.mubr.msk.bf16.gmra.mxu0 %vm659_vm0, %v546_v40  ;;  %988 = vmatprep.mubr.bf16.mxu1 %v3678_v0 }
 0x165   : > { %828 = vmatprep.mubr.bf16.mxu0 %v3678_v0 }
 0x166   : > { %v582_v49 = vpop.trf.xlu1 }
 0x167   : > { %v550_v50 = vpop.trf.xlu0 }
 0x16a   : > { %v591_v51 = vpop.trf.xlu1 }
 0x16b   : > { %2993 = vmatmul.mubr.msk.bf16.gmra.mxu1 %vm659_vm0, %v579_v41  ;;  %v559_v52 = vpop.trf.xlu0 }
 0x16c   : > { %2977 = vmatmul.mubr.msk.bf16.gmra.mxu0 %vm659_vm0, %v547_v42  ;;  %998 = vmatprep.mubr.bf16.mxu1 %v3678_v0 }
 0x16d   : > { %838 = vmatprep.mubr.bf16.mxu0 %v3678_v0 }
 0x16e   : > { %v592_v53 = vpop.trf.xlu1 }
 0x16f   : > { %v560_v54 = vpop.trf.xlu0 }
 0x172   : > { %v593_v57 = vpop.trf.xlu1 }
 0x173   : > { %2994 = vmatmul.mubr.msk.bf16.gmra.mxu1 %vm659_vm0, %v580_v43  ;;  %v561_v58 = vpop.trf.xlu0 }
 0x174   : > { %2978 = vmatmul.mubr.msk.bf16.gmra.mxu0 %vm659_vm0, %v548_v44  ;;  %1008 = vmatprep.mubr.bf16.mxu1 %v3678_v0 }
 0x175   : > { %848 = vmatprep.mubr.bf16.mxu0 %v3678_v0 }
 0x176   : > { %v594_v59 = vpop.trf.xlu1 }
 0x177   : > { %v562_v60 = vpop.trf.xlu0 }
 0x17a   : > { %v595_v61 = vpop.trf.xlu1 }
 0x17b   : > { %2995 = vmatmul.mubr.msk.bf16.gmra.mxu1 %vm659_vm0, %v581_v45  ;;  %v563_v62 = vpop.trf.xlu0 }
 0x17c   : > { %2979 = vmatmul.mubr.msk.bf16.gmra.mxu0 %vm659_vm0, %v549_v46  ;;  %1018 = vmatprep.mubr.bf16.mxu1 %v3678_v0 }
 0x17d   : > { %858 = vmatprep.mubr.bf16.mxu0 %v3678_v0 }
 0x17e   : > { %v596_v26 = vpop.trf.xlu1 }
 0x17f   : > { %v564_v29 = vpop.trf.xlu0 }
 0x182   : > { %v597_v2 = vpop.trf.xlu1 }
 0x183   : > { %2996 = vmatmul.mubr.msk.bf16.gmra.mxu1 %vm659_vm0, %v582_v49  ;;  %v565_v3 = vpop.trf.xlu0 }
 0x184   : > { %2980 = vmatmul.mubr.msk.bf16.gmra.mxu0 %vm659_vm0, %v550_v50  ;;  %1028 = vmatprep.mubr.bf16.mxu1 %v3678_v0 }
 0x185   : > { %868 = vmatprep.mubr.bf16.mxu0 %v3678_v0 }
 0x186   : > { %v598_v4 = vpop.trf.xlu1 }
 0x187   : > { %v566_v5 = vpop.trf.xlu0 }
 0x18b   : > { %2997 = vmatmul.mubr.msk.bf16.gmra.mxu1 %vm659_vm0, %v591_v51 }
 0x18c   : > { %2981 = vmatmul.mubr.msk.bf16.gmra.mxu0 %vm659_vm0, %v559_v52  ;;  %1038 = vmatprep.mubr.bf16.mxu1 %v3678_v0 }
 0x18d   : > { %878 = vmatprep.mubr.bf16.mxu0 %v3678_v0 }
 0x193   : > { %2998 = vmatmul.mubr.msk.bf16.gmra.mxu1 %vm659_vm0, %v592_v53 }
 0x194   : > { %2982 = vmatmul.mubr.msk.bf16.gmra.mxu0 %vm659_vm0, %v560_v54  ;;  %1048 = vmatprep.mubr.bf16.mxu1 %v3678_v0 }
 0x195   : > { %888 = vmatprep.mubr.bf16.mxu0 %v3678_v0 }
 0x19b   : > { %2999 = vmatmul.mubr.msk.bf16.gmra.mxu1 %vm659_vm0, %v593_v57 }
 0x19c   : > { %2983 = vmatmul.mubr.msk.bf16.gmra.mxu0 %vm659_vm0, %v561_v58  ;;  %1058 = vmatprep.mubr.bf16.mxu1 %v3678_v0 }
 0x19d   : > { %898 = vmatprep.mubr.bf16.mxu0 %v3678_v0 }
 0x1a3   : > { %3000 = vmatmul.mubr.msk.bf16.gmra.mxu1 %vm659_vm0, %v594_v59 }
 0x1a4   : > { %2984 = vmatmul.mubr.msk.bf16.gmra.mxu0 %vm659_vm0, %v562_v60  ;;  %1068 = vmatprep.mubr.bf16.mxu1 %v3678_v0 }
 0x1a5   : > { %908 = vmatprep.mubr.bf16.mxu0 %v3678_v0 }
 0x1ab   : > { %3001 = vmatmul.mubr.msk.bf16.gmra.mxu1 %vm659_vm0, %v595_v61 }
 0x1ac   : > { %2985 = vmatmul.mubr.msk.bf16.gmra.mxu0 %vm659_vm0, %v563_v62  ;;  %1078 = vmatprep.mubr.bf16.mxu1 %v3678_v0 }
 0x1ad   : > { %918 = vmatprep.mubr.bf16.mxu0 %v3678_v0 }
 0x1b3   : > { %3002 = vmatmul.mubr.msk.bf16.gmra.mxu1 %vm659_vm0, %v596_v26 }
 0x1b4   : > { %2986 = vmatmul.mubr.msk.bf16.gmra.mxu0 %vm659_vm0, %v564_v29  ;;  %1088 = vmatprep.mubr.bf16.mxu1 %v3678_v0 }
 0x1b5   : > { %928 = vmatprep.mubr.bf16.mxu0 %v3678_v0 }
 0x1bb   : > { %3003 = vmatmul.mubr.msk.bf16.gmra.mxu1 %vm659_vm0, %v597_v2 }
 0x1bc   : > { %2987 = vmatmul.mubr.msk.bf16.gmra.mxu0 %vm659_vm0, %v565_v3  ;;  %1098 = vmatprep.mubr.bf16.mxu1 %v3678_v0 }
 0x1bd   : > { %938 = vmatprep.mubr.bf16.mxu0 %v3678_v0 }
 0x1c3   : > { %3004 = vmatmul.mubr.msk.bf16.gmra.mxu1 %vm659_vm0, %v598_v4 }
 0x1c4   : > { %2988 = vmatmul.mubr.msk.bf16.gmra.mxu0 %vm659_vm0, %v566_v5 }
 0x20b   : > { %v950_v8 = vpop.f32.mrf.mxu1 }
 0x20c   : > { %v790_v12 = vpop.f32.mrf.mxu0  ;;  %v951_v0 = vadd.f32 %v950_v8, %v4056_v28 }
 0x20d   : > { %v791_v13 = vadd.f32 %v790_v12, %v4056_v28  ;;  %v952_v14 = vpop.f32.mrf.mxu1 }
 0x20e   : > { %v3299_v15 = vpack.c.bf16 %v951_v0, %v951_v0  ;;  %v792_v16 = vpop.f32.mrf.mxu0  ;;  %v953_v55 = vadd.f32 %v952_v14, %v4059_v9 }
 0x20f   : > { %v3267_v17 = vpack.c.bf16 %v791_v13, %v791_v13  ;;  %v793_v56 = vadd.f32 %v792_v16, %v4059_v9  ;;  %v954_v18 = vpop.f32.mrf.mxu1 }
 0x210   : > { %1430 = vst.msk [vmem:[%s4065_s29 + $0x80] sm:$0xf] %vm1397_vm1, %v3299_v15  ;;  %v3363_v19 = vpack.c.bf16 %v953_v55, %v953_v55  ;;  %v794_v20 = vpop.f32.mrf.mxu0  ;;  %v955_v21 = vadd.f32 %v954_v18, %v4056_v28 }
 0x211   : > { %1398 = vst.msk [vmem:[%s4065_s29] sm:$0xf] %vm1397_vm1, %v3267_v17  ;;  %v3331_v47 = vpack.c.bf16 %v793_v56, %v793_v56  ;;  %v795_v48 = vadd.f32 %v794_v20, %v4056_v28  ;;  %1462 = vrot.lane.b32.xlu0 %v3267_v17, %s3679_s8  ;;  %v956_v24 = vpop.f32.mrf.mxu1 }
 0x212   : > { %3229 = vst.msk [vmem:[%s4065_s29 + $0x280] sm:$0xf] %vm1397_vm1, %v3363_v19  ;;  %v3300_v27 = vpack.c.bf16 %v955_v21, %v955_v21  ;;  %v796_v30 = vpop.f32.mrf.mxu0  ;;  %v957_v31 = vadd.f32 %v956_v24, %v4059_v9 }
 0x213   : > { %3197 = vst.msk [vmem:[%s4065_s29 + $0x200] sm:$0xf] %vm1397_vm1, %v3331_v47  ;;  %v3268_v10 = vpack.c.bf16 %v795_v48, %v795_v48  ;;  %v797_v11 = vadd.f32 %v796_v30, %v4059_v9  ;;  %v960_v32 = vpop.f32.mrf.mxu1 }
 0x214   : > { %1431 = vst.msk [vmem:[%s4065_s29 + $0x84] sm:$0xf] %vm1397_vm1, %v3300_v27  ;;  %v3364_v33 = vpack.c.bf16 %v957_v31, %v957_v31  ;;  %v800_v34 = vpop.f32.mrf.mxu0  ;;  %v961_v63 = vadd.f32 %v960_v32, %v4056_v28 }
 0x215   : > { %1399 = vst.msk [vmem:[%s4065_s29 + $0x4] sm:$0xf] %vm1397_vm1, %v3268_v10  ;;  %v3332_v1 = vpack.c.bf16 %v797_v11, %v797_v11  ;;  %v801_v22 = vadd.f32 %v800_v34, %v4056_v28  ;;  %1464 = vrot.lane.b32.xlu1 %v3268_v10, %s3679_s8  ;;  %1526 = vrot.lane.b32.xlu0 %v3299_v15, %s3679_s8  ;;  %v962_v23 = vpop.f32.mrf.mxu1 }
 0x216   : > { %3230 = vst.msk [vmem:[%s4065_s29 + $0x284] sm:$0xf] %vm1397_vm1, %v3364_v33  ;;  %v3301_v35 = vpack.c.bf16 %v961_v63, %v961_v63  ;;  %v802_v36 = vpop.f32.mrf.mxu0  ;;  %v963_v39 = vadd.f32 %v962_v23, %v4059_v9 }
 0x217   : > { %3198 = vst.msk [vmem:[%s4065_s29 + $0x204] sm:$0xf] %vm1397_vm1, %v3332_v1  ;;  %v3269_v40 = vpack.c.bf16 %v801_v22, %v801_v22  ;;  %v803_v41 = vadd.f32 %v802_v36, %v4059_v9  ;;  %v964_v42 = vpop.f32.mrf.mxu1 }
 0x218   : > { %1432 = vst.msk [vmem:[%s4065_s29 + $0x88] sm:$0xf] %vm1397_vm1, %v3301_v35  ;;  %v3365_v43 = vpack.c.bf16 %v963_v39, %v963_v39  ;;  %v804_v44 = vpop.f32.mrf.mxu0  ;;  %v965_v45 = vadd.f32 %v964_v42, %v4056_v28 }
 0x219   : > { %1400 = vst.msk [vmem:[%s4065_s29 + $0x8] sm:$0xf] %vm1397_vm1, %v3269_v40  ;;  %v3333_v46 = vpack.c.bf16 %v803_v41, %v803_v41  ;;  %v805_v49 = vadd.f32 %v804_v44, %v4056_v28  ;;  %1528 = vrot.lane.b32.xlu1 %v3300_v27, %s3679_s8  ;;  %1466 = vrot.lane.b32.xlu0 %v3269_v40, %s3679_s8  ;;  %v966_v50 = vpop.f32.mrf.mxu1 }
 0x21a   : > { %3231 = vst.msk [vmem:[%s4065_s29 + $0x288] sm:$0xf] %vm1397_vm1, %v3365_v43  ;;  %v3302_v51 = vpack.c.bf16 %v965_v45, %v965_v45  ;;  %v806_v52 = vpop.f32.mrf.mxu0  ;;  %v967_v53 = vadd.f32 %v966_v50, %v4059_v9 }
 0x21b   : > { %3199 = vst.msk [vmem:[%s4065_s29 + $0x208] sm:$0xf] %vm1397_vm1, %v3333_v46  ;;  %v3270_v54 = vpack.c.bf16 %v805_v49, %v805_v49  ;;  %v807_v57 = vadd.f32 %v806_v52, %v4059_v9  ;;  %v970_v58 = vpop.f32.mrf.mxu1 }
 0x21c   : > { %1433 = vst.msk [vmem:[%s4065_s29 + $0x8c] sm:$0xf] %vm1397_vm1, %v3302_v51  ;;  %v3366_v59 = vpack.c.bf16 %v967_v53, %v967_v53  ;;  %v810_v60 = vpop.f32.mrf.mxu0  ;;  %v971_v61 = vadd.f32 %v970_v58, %v4056_v28 }
 0x21d   : > { %1401 = vst.msk [vmem:[%s4065_s29 + $0xc] sm:$0xf] %vm1397_vm1, %v3270_v54  ;;  %v3334_v62 = vpack.c.bf16 %v807_v57, %v807_v57  ;;  %v811_v26 = vadd.f32 %v810_v60, %v4056_v28  ;;  %1468 = vrot.lane.b32.xlu1 %v3270_v54, %s3679_s8  ;;  %1530 = vrot.lane.b32.xlu0 %v3301_v35, %s3679_s8  ;;  %v972_v29 = vpop.f32.mrf.mxu1 }
 0x21e   : > { %3232 = vst.msk [vmem:[%s4065_s29 + $0x28c] sm:$0xf] %vm1397_vm1, %v3366_v59  ;;  %v3303_v2 = vpack.c.bf16 %v971_v61, %v971_v61  ;;  %v812_v3 = vpop.f32.mrf.mxu0  ;;  %v973_v4 = vadd.f32 %v972_v29, %v4059_v9 }
 0x21f   : > { %3200 = vst.msk [vmem:[%s4065_s29 + $0x20c] sm:$0xf] %vm1397_vm1, %v3334_v62  ;;  %v3271_v5 = vpack.c.bf16 %v811_v26, %v811_v26  ;;  %v813_v38 = vadd.f32 %v812_v3, %v4059_v9  ;;  %v974_v37 = vpop.f32.mrf.mxu1 }
 0x220   : > { %1434 = vst.msk [vmem:[%s4065_s29 + $0x90] sm:$0xf] %vm1397_vm1, %v3303_v2  ;;  %v3367_v6 = vpack.c.bf16 %v973_v4, %v973_v4  ;;  %v814_v7 = vpop.f32.mrf.mxu0  ;;  %v975_v25 = vadd.f32 %v974_v37, %v4056_v28 }
 0x221   : > { %1402 = vst.msk [vmem:[%s4065_s29 + $0x10] sm:$0xf] %vm1397_vm1, %v3271_v5  ;;  %v3335_v8 = vpack.c.bf16 %v813_v38, %v813_v38  ;;  %v815_v12 = vadd.f32 %v814_v7, %v4056_v28  ;;  %1532 = vrot.lane.b32.xlu1 %v3302_v51, %s3679_s8  ;;  %1470 = vrot.lane.b32.xlu0 %v3271_v5, %s3679_s8  ;;  %v976_v0 = vpop.f32.mrf.mxu1 }
 0x222   : > { %3233 = vst.msk [vmem:[%s4065_s29 + $0x290] sm:$0xf] %vm1397_vm1, %v3367_v6  ;;  %v3304_v13 = vpack.c.bf16 %v975_v25, %v975_v25  ;;  %v816_v14 = vpop.f32.mrf.mxu0  ;;  %v977_v15 = vadd.f32 %v976_v0, %v4059_v9 }
 0x223   : > { %3201 = vst.msk [vmem:[%s4065_s29 + $0x210] sm:$0xf] %vm1397_vm1, %v3335_v8  ;;  %v3272_v16 = vpack.c.bf16 %v815_v12, %v815_v12  ;;  %v817_v55 = vadd.f32 %v816_v14, %v4059_v9  ;;  %v980_v17 = vpop.f32.mrf.mxu1 }
 0x224   : > { %1435 = vst.msk [vmem:[%s4065_s29 + $0x94] sm:$0xf] %vm1397_vm1, %v3304_v13  ;;  %v3368_v56 = vpack.c.bf16 %v977_v15, %v977_v15  ;;  %v820_v18 = vpop.f32.mrf.mxu0  ;;  %v981_v19 = vadd.f32 %v980_v17, %v4056_v28 }
 0x225   : > { %1403 = vst.msk [vmem:[%s4065_s29 + $0x14] sm:$0xf] %vm1397_vm1, %v3272_v16  ;;  %v3336_v20 = vpack.c.bf16 %v817_v55, %v817_v55  ;;  %v821_v21 = vadd.f32 %v820_v18, %v4056_v28  ;;  %1472 = vrot.lane.b32.xlu1 %v3272_v16, %s3679_s8  ;;  %1534 = vrot.lane.b32.xlu0 %v3303_v2, %s3679_s8  ;;  %v982_v47 = vpop.f32.mrf.mxu1 }
 0x226   : > { %3234 = vst.msk [vmem:[%s4065_s29 + $0x294] sm:$0xf] %vm1397_vm1, %v3368_v56  ;;  %v3305_v48 = vpack.c.bf16 %v981_v19, %v981_v19  ;;  %v822_v24 = vpop.f32.mrf.mxu0  ;;  %v983_v27 = vadd.f32 %v982_v47, %v4059_v9 }
 0x227   : > { %3202 = vst.msk [vmem:[%s4065_s29 + $0x214] sm:$0xf] %vm1397_vm1, %v3336_v20  ;;  %v3273_v30 = vpack.c.bf16 %v821_v21, %v821_v21  ;;  %v823_v31 = vadd.f32 %v822_v24, %v4059_v9  ;;  %v984_v10 = vpop.f32.mrf.mxu1 }
 0x228   : > { %1436 = vst.msk [vmem:[%s4065_s29 + $0x98] sm:$0xf] %vm1397_vm1, %v3305_v48  ;;  %v3369_v11 = vpack.c.bf16 %v983_v27, %v983_v27  ;;  %v824_v32 = vpop.f32.mrf.mxu0  ;;  %v985_v33 = vadd.f32 %v984_v10, %v4056_v28 }
 0x229   : > { %1404 = vst.msk [vmem:[%s4065_s29 + $0x18] sm:$0xf] %vm1397_vm1, %v3273_v30  ;;  %v3337_v34 = vpack.c.bf16 %v823_v31, %v823_v31  ;;  %v825_v63 = vadd.f32 %v824_v32, %v4056_v28  ;;  %1536 = vrot.lane.b32.xlu1 %v3304_v13, %s3679_s8  ;;  %1474 = vrot.lane.b32.xlu0 %v3273_v30, %s3679_s8  ;;  %v986_v1 = vpop.f32.mrf.mxu1 }
 0x22a   : > { %3235 = vst.msk [vmem:[%s4065_s29 + $0x298] sm:$0xf] %vm1397_vm1, %v3369_v11  ;;  %v3306_v22 = vpack.c.bf16 %v985_v33, %v985_v33  ;;  %v826_v23 = vpop.f32.mrf.mxu0  ;;  %v987_v35 = vadd.f32 %v986_v1, %v4059_v9 }
 0x22b   : > { %3203 = vst.msk [vmem:[%s4065_s29 + $0x218] sm:$0xf] %vm1397_vm1, %v3337_v34  ;;  %v3274_v36 = vpack.c.bf16 %v825_v63, %v825_v63  ;;  %v827_v39 = vadd.f32 %v826_v23, %v4059_v9  ;;  %v990_v40 = vpop.f32.mrf.mxu1 }
 0x22c   : > { %1437 = vst.msk [vmem:[%s4065_s29 + $0x9c] sm:$0xf] %vm1397_vm1, %v3306_v22  ;;  %v3370_v41 = vpack.c.bf16 %v987_v35, %v987_v35  ;;  %v830_v42 = vpop.f32.mrf.mxu0  ;;  %v991_v43 = vadd.f32 %v990_v40, %v4056_v28 }
 0x22d   : > { %1405 = vst.msk [vmem:[%s4065_s29 + $0x1c] sm:$0xf] %vm1397_vm1, %v3274_v36  ;;  %v3338_v44 = vpack.c.bf16 %v827_v39, %v827_v39  ;;  %v831_v45 = vadd.f32 %v830_v42, %v4056_v28  ;;  %1476 = vrot.lane.b32.xlu1 %v3274_v36, %s3679_s8  ;;  %1538 = vrot.lane.b32.xlu0 %v3305_v48, %s3679_s8  ;;  %v992_v46 = vpop.f32.mrf.mxu1 }
 0x22e   : > { %3236 = vst.msk [vmem:[%s4065_s29 + $0x29c] sm:$0xf] %vm1397_vm1, %v3370_v41  ;;  %v3307_v49 = vpack.c.bf16 %v991_v43, %v991_v43  ;;  %v832_v50 = vpop.f32.mrf.mxu0  ;;  %v993_v51 = vadd.f32 %v992_v46, %v4059_v9 }
 0x22f   : > { %3204 = vst.msk [vmem:[%s4065_s29 + $0x21c] sm:$0xf] %vm1397_vm1, %v3338_v44  ;;  %v3275_v52 = vpack.c.bf16 %v831_v45, %v831_v45  ;;  %v833_v53 = vadd.f32 %v832_v50, %v4059_v9  ;;  %v994_v54 = vpop.f32.mrf.mxu1 }
 0x230   : > { %1438 = vst.msk [vmem:[%s4065_s29 + $0xa0] sm:$0xf] %vm1397_vm1, %v3307_v49  ;;  %v3371_v57 = vpack.c.bf16 %v993_v51, %v993_v51  ;;  %v834_v58 = vpop.f32.mrf.mxu0  ;;  %v995_v59 = vadd.f32 %v994_v54, %v4056_v28 }
 0x231   : > { %1406 = vst.msk [vmem:[%s4065_s29 + $0x20] sm:$0xf] %vm1397_vm1, %v3275_v52  ;;  %v3339_v60 = vpack.c.bf16 %v833_v53, %v833_v53  ;;  %v835_v61 = vadd.f32 %v834_v58, %v4056_v28  ;;  %1540 = vrot.lane.b32.xlu1 %v3306_v22, %s3679_s8  ;;  %1478 = vrot.lane.b32.xlu0 %v3275_v52, %s3679_s8  ;;  %v996_v62 = vpop.f32.mrf.mxu1 }
 0x232   : > { %3237 = vst.msk [vmem:[%s4065_s29 + $0x2a0] sm:$0xf] %vm1397_vm1, %v3371_v57  ;;  %v3308_v26 = vpack.c.bf16 %v995_v59, %v995_v59  ;;  %v836_v29 = vpop.f32.mrf.mxu0  ;;  %v997_v2 = vadd.f32 %v996_v62, %v4059_v9 }
 0x233   : > { %3205 = vst.msk [vmem:[%s4065_s29 + $0x220] sm:$0xf] %vm1397_vm1, %v3339_v60  ;;  %v3276_v3 = vpack.c.bf16 %v835_v61, %v835_v61  ;;  %v837_v4 = vadd.f32 %v836_v29, %v4059_v9  ;;  %v1000_v5 = vpop.f32.mrf.mxu1 }
 0x234   : > { %1439 = vst.msk [vmem:[%s4065_s29 + $0xa4] sm:$0xf] %vm1397_vm1, %v3308_v26  ;;  %v3372_v38 = vpack.c.bf16 %v997_v2, %v997_v2  ;;  %v840_v37 = vpop.f32.mrf.mxu0  ;;  %v1001_v6 = vadd.f32 %v1000_v5, %v4056_v28 }
 0x235   : > { %1407 = vst.msk [vmem:[%s4065_s29 + $0x24] sm:$0xf] %vm1397_vm1, %v3276_v3  ;;  %v3340_v7 = vpack.c.bf16 %v837_v4, %v837_v4  ;;  %v841_v25 = vadd.f32 %v840_v37, %v4056_v28  ;;  %1480 = vrot.lane.b32.xlu1 %v3276_v3, %s3679_s8  ;;  %1542 = vrot.lane.b32.xlu0 %v3307_v49, %s3679_s8  ;;  %v1002_v8 = vpop.f32.mrf.mxu1 }
 0x236   : > { %3238 = vst.msk [vmem:[%s4065_s29 + $0x2a4] sm:$0xf] %vm1397_vm1, %v3372_v38  ;;  %v3309_v12 = vpack.c.bf16 %v1001_v6, %v1001_v6  ;;  %v842_v0 = vpop.f32.mrf.mxu0  ;;  %v1003_v13 = vadd.f32 %v1002_v8, %v4059_v9 }
 0x237   : > { %3206 = vst.msk [vmem:[%s4065_s29 + $0x224] sm:$0xf] %vm1397_vm1, %v3340_v7  ;;  %v3277_v14 = vpack.c.bf16 %v841_v25, %v841_v25  ;;  %v843_v15 = vadd.f32 %v842_v0, %v4059_v9  ;;  %v1004_v16 = vpop.f32.mrf.mxu1 }
 0x238   : > { %1440 = vst.msk [vmem:[%s4065_s29 + $0xa8] sm:$0xf] %vm1397_vm1, %v3309_v12  ;;  %v3373_v55 = vpack.c.bf16 %v1003_v13, %v1003_v13  ;;  %v844_v17 = vpop.f32.mrf.mxu0  ;;  %v1005_v56 = vadd.f32 %v1004_v16, %v4056_v28 }
 0x239   : > { %1408 = vst.msk [vmem:[%s4065_s29 + $0x28] sm:$0xf] %vm1397_vm1, %v3277_v14  ;;  %v3341_v18 = vpack.c.bf16 %v843_v15, %v843_v15  ;;  %v845_v19 = vadd.f32 %v844_v17, %v4056_v28  ;;  %1544 = vrot.lane.b32.xlu1 %v3308_v26, %s3679_s8  ;;  %1482 = vrot.lane.b32.xlu0 %v3277_v14, %s3679_s8  ;;  %v1006_v20 = vpop.f32.mrf.mxu1 }
 0x23a   : > { %3239 = vst.msk [vmem:[%s4065_s29 + $0x2a8] sm:$0xf] %vm1397_vm1, %v3373_v55  ;;  %v3310_v21 = vpack.c.bf16 %v1005_v56, %v1005_v56  ;;  %v846_v47 = vpop.f32.mrf.mxu0  ;;  %v1007_v48 = vadd.f32 %v1006_v20, %v4059_v9 }
 0x23b   : > { %3207 = vst.msk [vmem:[%s4065_s29 + $0x228] sm:$0xf] %vm1397_vm1, %v3341_v18  ;;  %v3278_v24 = vpack.c.bf16 %v845_v19, %v845_v19  ;;  %v847_v27 = vadd.f32 %v846_v47, %v4059_v9  ;;  %v1010_v30 = vpop.f32.mrf.mxu1 }
 0x23c   : > { %1441 = vst.msk [vmem:[%s4065_s29 + $0xac] sm:$0xf] %vm1397_vm1, %v3310_v21  ;;  %v3374_v31 = vpack.c.bf16 %v1007_v48, %v1007_v48  ;;  %v850_v10 = vpop.f32.mrf.mxu0  ;;  %v1011_v11 = vadd.f32 %v1010_v30, %v4056_v28 }
 0x23d   : > { %1409 = vst.msk [vmem:[%s4065_s29 + $0x2c] sm:$0xf] %vm1397_vm1, %v3278_v24  ;;  %v3342_v32 = vpack.c.bf16 %v847_v27, %v847_v27  ;;  %v851_v33 = vadd.f32 %v850_v10, %v4056_v28  ;;  %1484 = vrot.lane.b32.xlu1 %v3278_v24, %s3679_s8  ;;  %1546 = vrot.lane.b32.xlu0 %v3309_v12, %s3679_s8  ;;  %v1012_v34 = vpop.f32.mrf.mxu1 }
 0x23e   : > { %3240 = vst.msk [vmem:[%s4065_s29 + $0x2ac] sm:$0xf] %vm1397_vm1, %v3374_v31  ;;  %v3311_v63 = vpack.c.bf16 %v1011_v11, %v1011_v11  ;;  %v852_v1 = vpop.f32.mrf.mxu0  ;;  %v1013_v22 = vadd.f32 %v1012_v34, %v4059_v9 }
 0x23f   : > { %3208 = vst.msk [vmem:[%s4065_s29 + $0x22c] sm:$0xf] %vm1397_vm1, %v3342_v32  ;;  %v3279_v23 = vpack.c.bf16 %v851_v33, %v851_v33  ;;  %v853_v35 = vadd.f32 %v852_v1, %v4059_v9  ;;  %v1014_v36 = vpop.f32.mrf.mxu1 }
 0x240   : > { %1442 = vst.msk [vmem:[%s4065_s29 + $0xb0] sm:$0xf] %vm1397_vm1, %v3311_v63  ;;  %v3375_v39 = vpack.c.bf16 %v1013_v22, %v1013_v22  ;;  %v854_v40 = vpop.f32.mrf.mxu0  ;;  %v1015_v41 = vadd.f32 %v1014_v36, %v4056_v28 }
 0x241   : > { %1410 = vst.msk [vmem:[%s4065_s29 + $0x30] sm:$0xf] %vm1397_vm1, %v3279_v23  ;;  %v3343_v42 = vpack.c.bf16 %v853_v35, %v853_v35  ;;  %v855_v43 = vadd.f32 %v854_v40, %v4056_v28  ;;  %1548 = vrot.lane.b32.xlu1 %v3310_v21, %s3679_s8  ;;  %1486 = vrot.lane.b32.xlu0 %v3279_v23, %s3679_s8  ;;  %v1016_v44 = vpop.f32.mrf.mxu1 }
 0x242   : > { %3241 = vst.msk [vmem:[%s4065_s29 + $0x2b0] sm:$0xf] %vm1397_vm1, %v3375_v39  ;;  %v3312_v45 = vpack.c.bf16 %v1015_v41, %v1015_v41  ;;  %v856_v46 = vpop.f32.mrf.mxu0  ;;  %v1017_v49 = vadd.f32 %v1016_v44, %v4059_v9 }
 0x243   : > { %3209 = vst.msk [vmem:[%s4065_s29 + $0x230] sm:$0xf] %vm1397_vm1, %v3343_v42  ;;  %v3280_v50 = vpack.c.bf16 %v855_v43, %v855_v43  ;;  %v857_v51 = vadd.f32 %v856_v46, %v4059_v9  ;;  %v1020_v52 = vpop.f32.mrf.mxu1 }
 0x244   : > { %1443 = vst.msk [vmem:[%s4065_s29 + $0xb4] sm:$0xf] %vm1397_vm1, %v3312_v45  ;;  %v3376_v53 = vpack.c.bf16 %v1017_v49, %v1017_v49  ;;  %v860_v54 = vpop.f32.mrf.mxu0  ;;  %v1021_v57 = vadd.f32 %v1020_v52, %v4056_v28 }
 0x245   : > { %1411 = vst.msk [vmem:[%s4065_s29 + $0x34] sm:$0xf] %vm1397_vm1, %v3280_v50  ;;  %v3344_v58 = vpack.c.bf16 %v857_v51, %v857_v51  ;;  %v861_v59 = vadd.f32 %v860_v54, %v4056_v28  ;;  %1488 = vrot.lane.b32.xlu1 %v3280_v50, %s3679_s8  ;;  %1550 = vrot.lane.b32.xlu0 %v3311_v63, %s3679_s8  ;;  %v1022_v60 = vpop.f32.mrf.mxu1 }
 0x246   : > { %3242 = vst.msk [vmem:[%s4065_s29 + $0x2b4] sm:$0xf] %vm1397_vm1, %v3376_v53  ;;  %v3313_v61 = vpack.c.bf16 %v1021_v57, %v1021_v57  ;;  %v862_v62 = vpop.f32.mrf.mxu0  ;;  %v1023_v26 = vadd.f32 %v1022_v60, %v4059_v9 }
 0x247   : > { %3210 = vst.msk [vmem:[%s4065_s29 + $0x234] sm:$0xf] %vm1397_vm1, %v3344_v58  ;;  %v3281_v29 = vpack.c.bf16 %v861_v59, %v861_v59  ;;  %v863_v2 = vadd.f32 %v862_v62, %v4059_v9  ;;  %v1024_v3 = vpop.f32.mrf.mxu1 }
 0x248   : > { %1444 = vst.msk [vmem:[%s4065_s29 + $0xb8] sm:$0xf] %vm1397_vm1, %v3313_v61  ;;  %v3377_v4 = vpack.c.bf16 %v1023_v26, %v1023_v26  ;;  %v864_v5 = vpop.f32.mrf.mxu0  ;;  %v1025_v38 = vadd.f32 %v1024_v3, %v4056_v28 }
 0x249   : > { %1412 = vst.msk [vmem:[%s4065_s29 + $0x38] sm:$0xf] %vm1397_vm1, %v3281_v29  ;;  %v3345_v37 = vpack.c.bf16 %v863_v2, %v863_v2  ;;  %v865_v6 = vadd.f32 %v864_v5, %v4056_v28  ;;  %1552 = vrot.lane.b32.xlu1 %v3312_v45, %s3679_s8  ;;  %1490 = vrot.lane.b32.xlu0 %v3281_v29, %s3679_s8  ;;  %v1026_v7 = vpop.f32.mrf.mxu1 }
 0x24a   : > { %3243 = vst.msk [vmem:[%s4065_s29 + $0x2b8] sm:$0xf] %vm1397_vm1, %v3377_v4  ;;  %v3314_v25 = vpack.c.bf16 %v1025_v38, %v1025_v38  ;;  %v866_v8 = vpop.f32.mrf.mxu0  ;;  %v1027_v12 = vadd.f32 %v1026_v7, %v4059_v9 }
 0x24b   : > { %3211 = vst.msk [vmem:[%s4065_s29 + $0x238] sm:$0xf] %vm1397_vm1, %v3345_v37  ;;  %v3282_v0 = vpack.c.bf16 %v865_v6, %v865_v6  ;;  %v867_v13 = vadd.f32 %v866_v8, %v4059_v9  ;;  %v1030_v14 = vpop.f32.mrf.mxu1 }
 0x24c   : > { %1445 = vst.msk [vmem:[%s4065_s29 + $0xbc] sm:$0xf] %vm1397_vm1, %v3314_v25  ;;  %v3378_v15 = vpack.c.bf16 %v1027_v12, %v1027_v12  ;;  %v870_v16 = vpop.f32.mrf.mxu0  ;;  %v1031_v55 = vadd.f32 %v1030_v14, %v4056_v28 }
 0x24d   : > { %1413 = vst.msk [vmem:[%s4065_s29 + $0x3c] sm:$0xf] %vm1397_vm1, %v3282_v0  ;;  %v3346_v17 = vpack.c.bf16 %v867_v13, %v867_v13  ;;  %v871_v56 = vadd.f32 %v870_v16, %v4056_v28  ;;  %1492 = vrot.lane.b32.xlu1 %v3282_v0, %s3679_s8  ;;  %1554 = vrot.lane.b32.xlu0 %v3313_v61, %s3679_s8  ;;  %v1032_v18 = vpop.f32.mrf.mxu1 }
 0x24e   : > { %3244 = vst.msk [vmem:[%s4065_s29 + $0x2bc] sm:$0xf] %vm1397_vm1, %v3378_v15  ;;  %v3315_v19 = vpack.c.bf16 %v1031_v55, %v1031_v55  ;;  %v872_v20 = vpop.f32.mrf.mxu0  ;;  %v1033_v21 = vadd.f32 %v1032_v18, %v4059_v9 }
 0x24f   : > { %3212 = vst.msk [vmem:[%s4065_s29 + $0x23c] sm:$0xf] %vm1397_vm1, %v3346_v17  ;;  %v3283_v47 = vpack.c.bf16 %v871_v56, %v871_v56  ;;  %v873_v48 = vadd.f32 %v872_v20, %v4059_v9  ;;  %v1034_v24 = vpop.f32.mrf.mxu1 }
 0x250   : > { %1446 = vst.msk [vmem:[%s4065_s29 + $0xc0] sm:$0xf] %vm1397_vm1, %v3315_v19  ;;  %v3379_v27 = vpack.c.bf16 %v1033_v21, %v1033_v21  ;;  %v874_v30 = vpop.f32.mrf.mxu0  ;;  %v1035_v31 = vadd.f32 %v1034_v24, %v4056_v28 }
 0x251   : > { %1414 = vst.msk [vmem:[%s4065_s29 + $0x40] sm:$0xf] %vm1397_vm1, %v3283_v47  ;;  %v3347_v10 = vpack.c.bf16 %v873_v48, %v873_v48  ;;  %v875_v11 = vadd.f32 %v874_v30, %v4056_v28  ;;  %1556 = vrot.lane.b32.xlu1 %v3314_v25, %s3679_s8  ;;  %1494 = vrot.lane.b32.xlu0 %v3283_v47, %s3679_s8  ;;  %v1036_v32 = vpop.f32.mrf.mxu1 }
 0x252   : > { %3245 = vst.msk [vmem:[%s4065_s29 + $0x2c0] sm:$0xf] %vm1397_vm1, %v3379_v27  ;;  %v3316_v33 = vpack.c.bf16 %v1035_v31, %v1035_v31  ;;  %v876_v34 = vpop.f32.mrf.mxu0  ;;  %v1037_v63 = vadd.f32 %v1036_v32, %v4059_v9 }
 0x253   : > { %3213 = vst.msk [vmem:[%s4065_s29 + $0x240] sm:$0xf] %vm1397_vm1, %v3347_v10  ;;  %v3284_v1 = vpack.c.bf16 %v875_v11, %v875_v11  ;;  %v877_v22 = vadd.f32 %v876_v34, %v4059_v9  ;;  %v1040_v23 = vpop.f32.mrf.mxu1 }
 0x254   : > { %1447 = vst.msk [vmem:[%s4065_s29 + $0xc4] sm:$0xf] %vm1397_vm1, %v3316_v33  ;;  %v3380_v35 = vpack.c.bf16 %v1037_v63, %v1037_v63  ;;  %v880_v36 = vpop.f32.mrf.mxu0  ;;  %v1041_v39 = vadd.f32 %v1040_v23, %v4056_v28 }
 0x255   : > { %1415 = vst.msk [vmem:[%s4065_s29 + $0x44] sm:$0xf] %vm1397_vm1, %v3284_v1  ;;  %v3348_v40 = vpack.c.bf16 %v877_v22, %v877_v22  ;;  %v881_v41 = vadd.f32 %v880_v36, %v4056_v28  ;;  %1496 = vrot.lane.b32.xlu1 %v3284_v1, %s3679_s8  ;;  %1558 = vrot.lane.b32.xlu0 %v3315_v19, %s3679_s8  ;;  %v1042_v42 = vpop.f32.mrf.mxu1 }
 0x256   : > { %3246 = vst.msk [vmem:[%s4065_s29 + $0x2c4] sm:$0xf] %vm1397_vm1, %v3380_v35  ;;  %v3317_v43 = vpack.c.bf16 %v1041_v39, %v1041_v39  ;;  %v882_v44 = vpop.f32.mrf.mxu0  ;;  %v1043_v45 = vadd.f32 %v1042_v42, %v4059_v9 }
 0x257   : > { %3214 = vst.msk [vmem:[%s4065_s29 + $0x244] sm:$0xf] %vm1397_vm1, %v3348_v40  ;;  %v3285_v46 = vpack.c.bf16 %v881_v41, %v881_v41  ;;  %v883_v49 = vadd.f32 %v882_v44, %v4059_v9  ;;  %v1044_v50 = vpop.f32.mrf.mxu1 }
 0x258   : > { %1448 = vst.msk [vmem:[%s4065_s29 + $0xc8] sm:$0xf] %vm1397_vm1, %v3317_v43  ;;  %v3381_v51 = vpack.c.bf16 %v1043_v45, %v1043_v45  ;;  %v884_v52 = vpop.f32.mrf.mxu0  ;;  %v1045_v53 = vadd.f32 %v1044_v50, %v4056_v28 }
 0x259   : > { %1416 = vst.msk [vmem:[%s4065_s29 + $0x48] sm:$0xf] %vm1397_vm1, %v3285_v46  ;;  %v3349_v54 = vpack.c.bf16 %v883_v49, %v883_v49  ;;  %v885_v57 = vadd.f32 %v884_v52, %v4056_v28  ;;  %1560 = vrot.lane.b32.xlu1 %v3316_v33, %s3679_s8  ;;  %1498 = vrot.lane.b32.xlu0 %v3285_v46, %s3679_s8  ;;  %v1046_v58 = vpop.f32.mrf.mxu1 }
 0x25a   : > { %3247 = vst.msk [vmem:[%s4065_s29 + $0x2c8] sm:$0xf] %vm1397_vm1, %v3381_v51  ;;  %v3318_v59 = vpack.c.bf16 %v1045_v53, %v1045_v53  ;;  %v886_v60 = vpop.f32.mrf.mxu0  ;;  %v1047_v61 = vadd.f32 %v1046_v58, %v4059_v9 }
 0x25b   : > { %3215 = vst.msk [vmem:[%s4065_s29 + $0x248] sm:$0xf] %vm1397_vm1, %v3349_v54  ;;  %v3286_v62 = vpack.c.bf16 %v885_v57, %v885_v57  ;;  %v887_v26 = vadd.f32 %v886_v60, %v4059_v9  ;;  %v1050_v29 = vpop.f32.mrf.mxu1 }
 0x25c   : > { %1449 = vst.msk [vmem:[%s4065_s29 + $0xcc] sm:$0xf] %vm1397_vm1, %v3318_v59  ;;  %v3382_v2 = vpack.c.bf16 %v1047_v61, %v1047_v61  ;;  %v890_v3 = vpop.f32.mrf.mxu0  ;;  %v1051_v4 = vadd.f32 %v1050_v29, %v4056_v28 }
 0x25d   : > { %1417 = vst.msk [vmem:[%s4065_s29 + $0x4c] sm:$0xf] %vm1397_vm1, %v3286_v62  ;;  %v3350_v5 = vpack.c.bf16 %v887_v26, %v887_v26  ;;  %v891_v38 = vadd.f32 %v890_v3, %v4056_v28  ;;  %1500 = vrot.lane.b32.xlu1 %v3286_v62, %s3679_s8  ;;  %1562 = vrot.lane.b32.xlu0 %v3317_v43, %s3679_s8  ;;  %v1052_v37 = vpop.f32.mrf.mxu1 }
 0x25e   : > { %3248 = vst.msk [vmem:[%s4065_s29 + $0x2cc] sm:$0xf] %vm1397_vm1, %v3382_v2  ;;  %v3319_v6 = vpack.c.bf16 %v1051_v4, %v1051_v4  ;;  %v892_v7 = vpop.f32.mrf.mxu0  ;;  %v1053_v25 = vadd.f32 %v1052_v37, %v4059_v9 }
 0x25f   : > { %3216 = vst.msk [vmem:[%s4065_s29 + $0x24c] sm:$0xf] %vm1397_vm1, %v3350_v5  ;;  %v3287_v8 = vpack.c.bf16 %v891_v38, %v891_v38  ;;  %v893_v12 = vadd.f32 %v892_v7, %v4059_v9  ;;  %v1054_v0 = vpop.f32.mrf.mxu1 }
 0x260   : > { %1450 = vst.msk [vmem:[%s4065_s29 + $0xd0] sm:$0xf] %vm1397_vm1, %v3319_v6  ;;  %v3383_v13 = vpack.c.bf16 %v1053_v25, %v1053_v25  ;;  %v894_v14 = vpop.f32.mrf.mxu0  ;;  %v1055_v15 = vadd.f32 %v1054_v0, %v4056_v28 }
 0x261   : > { %1418 = vst.msk [vmem:[%s4065_s29 + $0x50] sm:$0xf] %vm1397_vm1, %v3287_v8  ;;  %v3351_v16 = vpack.c.bf16 %v893_v12, %v893_v12  ;;  %v895_v55 = vadd.f32 %v894_v14, %v4056_v28  ;;  %1564 = vrot.lane.b32.xlu1 %v3318_v59, %s3679_s8  ;;  %1502 = vrot.lane.b32.xlu0 %v3287_v8, %s3679_s8  ;;  %v1056_v17 = vpop.f32.mrf.mxu1 }
 0x262   : > { %3249 = vst.msk [vmem:[%s4065_s29 + $0x2d0] sm:$0xf] %vm1397_vm1, %v3383_v13  ;;  %v3320_v56 = vpack.c.bf16 %v1055_v15, %v1055_v15  ;;  %v896_v18 = vpop.f32.mrf.mxu0  ;;  %v1057_v19 = vadd.f32 %v1056_v17, %v4059_v9 }
 0x263   : > { %3217 = vst.msk [vmem:[%s4065_s29 + $0x250] sm:$0xf] %vm1397_vm1, %v3351_v16  ;;  %v3288_v20 = vpack.c.bf16 %v895_v55, %v895_v55  ;;  %v897_v21 = vadd.f32 %v896_v18, %v4059_v9  ;;  %v1060_v47 = vpop.f32.mrf.mxu1 }
 0x264   : > { %1451 = vst.msk [vmem:[%s4065_s29 + $0xd4] sm:$0xf] %vm1397_vm1, %v3320_v56  ;;  %v3384_v48 = vpack.c.bf16 %v1057_v19, %v1057_v19  ;;  %v900_v24 = vpop.f32.mrf.mxu0  ;;  %v1061_v27 = vadd.f32 %v1060_v47, %v4056_v28 }
 0x265   : > { %1419 = vst.msk [vmem:[%s4065_s29 + $0x54] sm:$0xf] %vm1397_vm1, %v3288_v20  ;;  %v3352_v30 = vpack.c.bf16 %v897_v21, %v897_v21  ;;  %v901_v31 = vadd.f32 %v900_v24, %v4056_v28  ;;  %1504 = vrot.lane.b32.xlu1 %v3288_v20, %s3679_s8  ;;  %1566 = vrot.lane.b32.xlu0 %v3319_v6, %s3679_s8  ;;  %v1062_v10 = vpop.f32.mrf.mxu1 }
 0x266   : > { %3250 = vst.msk [vmem:[%s4065_s29 + $0x2d4] sm:$0xf] %vm1397_vm1, %v3384_v48  ;;  %v3321_v11 = vpack.c.bf16 %v1061_v27, %v1061_v27  ;;  %v902_v32 = vpop.f32.mrf.mxu0  ;;  %v1063_v33 = vadd.f32 %v1062_v10, %v4059_v9 }
 0x267   : > { %3218 = vst.msk [vmem:[%s4065_s29 + $0x254] sm:$0xf] %vm1397_vm1, %v3352_v30  ;;  %v3289_v34 = vpack.c.bf16 %v901_v31, %v901_v31  ;;  %v903_v63 = vadd.f32 %v902_v32, %v4059_v9  ;;  %v1064_v1 = vpop.f32.mrf.mxu1 }
 0x268   : > { %1452 = vst.msk [vmem:[%s4065_s29 + $0xd8] sm:$0xf] %vm1397_vm1, %v3321_v11  ;;  %v3385_v22 = vpack.c.bf16 %v1063_v33, %v1063_v33  ;;  %v904_v23 = vpop.f32.mrf.mxu0  ;;  %v1065_v35 = vadd.f32 %v1064_v1, %v4056_v28 }
 0x269   : > { %1420 = vst.msk [vmem:[%s4065_s29 + $0x58] sm:$0xf] %vm1397_vm1, %v3289_v34  ;;  %v3353_v36 = vpack.c.bf16 %v903_v63, %v903_v63  ;;  %v905_v39 = vadd.f32 %v904_v23, %v4056_v28  ;;  %1568 = vrot.lane.b32.xlu1 %v3320_v56, %s3679_s8  ;;  %1506 = vrot.lane.b32.xlu0 %v3289_v34, %s3679_s8  ;;  %v1066_v40 = vpop.f32.mrf.mxu1 }
 0x26a   : > { %3251 = vst.msk [vmem:[%s4065_s29 + $0x2d8] sm:$0xf] %vm1397_vm1, %v3385_v22  ;;  %v3322_v41 = vpack.c.bf16 %v1065_v35, %v1065_v35  ;;  %v906_v42 = vpop.f32.mrf.mxu0  ;;  %v1067_v43 = vadd.f32 %v1066_v40, %v4059_v9 }
 0x26b   : > { %3219 = vst.msk [vmem:[%s4065_s29 + $0x258] sm:$0xf] %vm1397_vm1, %v3353_v36  ;;  %v3290_v44 = vpack.c.bf16 %v905_v39, %v905_v39  ;;  %v907_v45 = vadd.f32 %v906_v42, %v4059_v9  ;;  %v1070_v46 = vpop.f32.mrf.mxu1 }
 0x26c   : > { %1453 = vst.msk [vmem:[%s4065_s29 + $0xdc] sm:$0xf] %vm1397_vm1, %v3322_v41  ;;  %v3386_v49 = vpack.c.bf16 %v1067_v43, %v1067_v43  ;;  %v910_v50 = vpop.f32.mrf.mxu0  ;;  %v1071_v51 = vadd.f32 %v1070_v46, %v4056_v28 }
 0x26d   : > { %1421 = vst.msk [vmem:[%s4065_s29 + $0x5c] sm:$0xf] %vm1397_vm1, %v3290_v44  ;;  %v3354_v52 = vpack.c.bf16 %v907_v45, %v907_v45  ;;  %v911_v53 = vadd.f32 %v910_v50, %v4056_v28  ;;  %1508 = vrot.lane.b32.xlu1 %v3290_v44, %s3679_s8  ;;  %1570 = vrot.lane.b32.xlu0 %v3321_v11, %s3679_s8  ;;  %v1072_v54 = vpop.f32.mrf.mxu1 }
 0x26e   : > { %3252 = vst.msk [vmem:[%s4065_s29 + $0x2dc] sm:$0xf] %vm1397_vm1, %v3386_v49  ;;  %v3323_v57 = vpack.c.bf16 %v1071_v51, %v1071_v51  ;;  %v912_v58 = vpop.f32.mrf.mxu0  ;;  %v1073_v59 = vadd.f32 %v1072_v54, %v4059_v9 }
 0x26f   : > { %3220 = vst.msk [vmem:[%s4065_s29 + $0x25c] sm:$0xf] %vm1397_vm1, %v3354_v52  ;;  %v3291_v60 = vpack.c.bf16 %v911_v53, %v911_v53  ;;  %v913_v61 = vadd.f32 %v912_v58, %v4059_v9  ;;  %v1074_v62 = vpop.f32.mrf.mxu1 }
 0x270   : > { %1454 = vst.msk [vmem:[%s4065_s29 + $0xe0] sm:$0xf] %vm1397_vm1, %v3323_v57  ;;  %v3387_v26 = vpack.c.bf16 %v1073_v59, %v1073_v59  ;;  %v914_v29 = vpop.f32.mrf.mxu0  ;;  %v1075_v2 = vadd.f32 %v1074_v62, %v4056_v28 }
 0x271   : > { %1422 = vst.msk [vmem:[%s4065_s29 + $0x60] sm:$0xf] %vm1397_vm1, %v3291_v60  ;;  %v3355_v3 = vpack.c.bf16 %v913_v61, %v913_v61  ;;  %v915_v4 = vadd.f32 %v914_v29, %v4056_v28  ;;  %1572 = vrot.lane.b32.xlu1 %v3322_v41, %s3679_s8  ;;  %1510 = vrot.lane.b32.xlu0 %v3291_v60, %s3679_s8  ;;  %v1076_v5 = vpop.f32.mrf.mxu1 }
 0x272   : > { %3253 = vst.msk [vmem:[%s4065_s29 + $0x2e0] sm:$0xf] %vm1397_vm1, %v3387_v26  ;;  %v3324_v38 = vpack.c.bf16 %v1075_v2, %v1075_v2  ;;  %v916_v37 = vpop.f32.mrf.mxu0  ;;  %v1077_v6 = vadd.f32 %v1076_v5, %v4059_v9 }
 0x273   : > { %3221 = vst.msk [vmem:[%s4065_s29 + $0x260] sm:$0xf] %vm1397_vm1, %v3355_v3  ;;  %v3292_v7 = vpack.c.bf16 %v915_v4, %v915_v4  ;;  %v917_v25 = vadd.f32 %v916_v37, %v4059_v9  ;;  %v1080_v8 = vpop.f32.mrf.mxu1 }
 0x274   : > { %1455 = vst.msk [vmem:[%s4065_s29 + $0xe4] sm:$0xf] %vm1397_vm1, %v3324_v38  ;;  %v3388_v12 = vpack.c.bf16 %v1077_v6, %v1077_v6  ;;  %v920_v0 = vpop.f32.mrf.mxu0  ;;  %v1081_v13 = vadd.f32 %v1080_v8, %v4056_v28 }
 0x275   : > { %1423 = vst.msk [vmem:[%s4065_s29 + $0x64] sm:$0xf] %vm1397_vm1, %v3292_v7  ;;  %v3356_v14 = vpack.c.bf16 %v917_v25, %v917_v25  ;;  %v921_v15 = vadd.f32 %v920_v0, %v4056_v28  ;;  %1512 = vrot.lane.b32.xlu1 %v3292_v7, %s3679_s8  ;;  %1574 = vrot.lane.b32.xlu0 %v3323_v57, %s3679_s8  ;;  %v1082_v16 = vpop.f32.mrf.mxu1 }
 0x276   : > { %3254 = vst.msk [vmem:[%s4065_s29 + $0x2e4] sm:$0xf] %vm1397_vm1, %v3388_v12  ;;  %v3325_v55 = vpack.c.bf16 %v1081_v13, %v1081_v13  ;;  %v922_v17 = vpop.f32.mrf.mxu0  ;;  %v1083_v56 = vadd.f32 %v1082_v16, %v4059_v9 }
 0x277   : > { %3222 = vst.msk [vmem:[%s4065_s29 + $0x264] sm:$0xf] %vm1397_vm1, %v3356_v14  ;;  %v3293_v18 = vpack.c.bf16 %v921_v15, %v921_v15  ;;  %v923_v19 = vadd.f32 %v922_v17, %v4059_v9  ;;  %v1084_v20 = vpop.f32.mrf.mxu1 }
 0x278   : > { %1456 = vst.msk [vmem:[%s4065_s29 + $0xe8] sm:$0xf] %vm1397_vm1, %v3325_v55  ;;  %v3389_v21 = vpack.c.bf16 %v1083_v56, %v1083_v56  ;;  %v924_v47 = vpop.f32.mrf.mxu0  ;;  %v1085_v48 = vadd.f32 %v1084_v20, %v4056_v28 }
 0x279   : > { %1424 = vst.msk [vmem:[%s4065_s29 + $0x68] sm:$0xf] %vm1397_vm1, %v3293_v18  ;;  %v3357_v24 = vpack.c.bf16 %v923_v19, %v923_v19  ;;  %v925_v27 = vadd.f32 %v924_v47, %v4056_v28  ;;  %1576 = vrot.lane.b32.xlu1 %v3324_v38, %s3679_s8  ;;  %1514 = vrot.lane.b32.xlu0 %v3293_v18, %s3679_s8  ;;  %v1086_v30 = vpop.f32.mrf.mxu1 }
 0x27a   : > { %3255 = vst.msk [vmem:[%s4065_s29 + $0x2e8] sm:$0xf] %vm1397_vm1, %v3389_v21  ;;  %v3326_v31 = vpack.c.bf16 %v1085_v48, %v1085_v48  ;;  %v926_v10 = vpop.f32.mrf.mxu0  ;;  %v1087_v11 = vadd.f32 %v1086_v30, %v4059_v9 }
 0x27b   : > { %3223 = vst.msk [vmem:[%s4065_s29 + $0x268] sm:$0xf] %vm1397_vm1, %v3357_v24  ;;  %v3294_v32 = vpack.c.bf16 %v925_v27, %v925_v27  ;;  %v927_v33 = vadd.f32 %v926_v10, %v4059_v9  ;;  %v1090_v34 = vpop.f32.mrf.mxu1 }
 0x27c   : > { %1457 = vst.msk [vmem:[%s4065_s29 + $0xec] sm:$0xf] %vm1397_vm1, %v3326_v31  ;;  %v3390_v63 = vpack.c.bf16 %v1087_v11, %v1087_v11  ;;  %v930_v1 = vpop.f32.mrf.mxu0  ;;  %v1091_v22 = vadd.f32 %v1090_v34, %v4056_v28 }
 0x27d   : > { %1425 = vst.msk [vmem:[%s4065_s29 + $0x6c] sm:$0xf] %vm1397_vm1, %v3294_v32  ;;  %v3358_v23 = vpack.c.bf16 %v927_v33, %v927_v33  ;;  %v931_v35 = vadd.f32 %v930_v1, %v4056_v28  ;;  %1516 = vrot.lane.b32.xlu1 %v3294_v32, %s3679_s8  ;;  %1578 = vrot.lane.b32.xlu0 %v3325_v55, %s3679_s8  ;;  %v1092_v36 = vpop.f32.mrf.mxu1 }
 0x27e   : > { %3256 = vst.msk [vmem:[%s4065_s29 + $0x2ec] sm:$0xf] %vm1397_vm1, %v3390_v63  ;;  %v3327_v39 = vpack.c.bf16 %v1091_v22, %v1091_v22  ;;  %v932_v40 = vpop.f32.mrf.mxu0  ;;  %v1093_v41 = vadd.f32 %v1092_v36, %v4059_v9 }
 0x27f   : > { %3224 = vst.msk [vmem:[%s4065_s29 + $0x26c] sm:$0xf] %vm1397_vm1, %v3358_v23  ;;  %v3295_v42 = vpack.c.bf16 %v931_v35, %v931_v35  ;;  %v933_v43 = vadd.f32 %v932_v40, %v4059_v9  ;;  %v1094_v44 = vpop.f32.mrf.mxu1 }
 0x280   : > { %1458 = vst.msk [vmem:[%s4065_s29 + $0xf0] sm:$0xf] %vm1397_vm1, %v3327_v39  ;;  %v3391_v45 = vpack.c.bf16 %v1093_v41, %v1093_v41  ;;  %v934_v46 = vpop.f32.mrf.mxu0  ;;  %v1095_v49 = vadd.f32 %v1094_v44, %v4056_v28 }
 0x281   : > { %1426 = vst.msk [vmem:[%s4065_s29 + $0x70] sm:$0xf] %vm1397_vm1, %v3295_v42  ;;  %v3359_v50 = vpack.c.bf16 %v933_v43, %v933_v43  ;;  %v935_v51 = vadd.f32 %v934_v46, %v4056_v28  ;;  %1580 = vrot.lane.b32.xlu1 %v3326_v31, %s3679_s8  ;;  %1518 = vrot.lane.b32.xlu0 %v3295_v42, %s3679_s8  ;;  %v1096_v52 = vpop.f32.mrf.mxu1 }
 0x282   : > { %3257 = vst.msk [vmem:[%s4065_s29 + $0x2f0] sm:$0xf] %vm1397_vm1, %v3391_v45  ;;  %v3328_v53 = vpack.c.bf16 %v1095_v49, %v1095_v49  ;;  %v936_v54 = vpop.f32.mrf.mxu0  ;;  %v1097_v57 = vadd.f32 %v1096_v52, %v4059_v9 }
 0x283   : > { %3225 = vst.msk [vmem:[%s4065_s29 + $0x270] sm:$0xf] %vm1397_vm1, %v3359_v50  ;;  %v3296_v58 = vpack.c.bf16 %v935_v51, %v935_v51  ;;  %v937_v59 = vadd.f32 %v936_v54, %v4059_v9  ;;  %v1463_v60 = vpop.permute.xlu0 %1462  ;;  %v1100_v61 = vpop.f32.mrf.mxu1 }
 0x284   : > { %1459 = vst.msk [vmem:[%s4065_s29 + $0xf4] sm:$0xf] %vm1397_vm1, %v3328_v53  ;;  %v3392_v62 = vpack.c.bf16 %v1097_v57, %v1097_v57  ;;  %3069 = vst.msk [vmem:[%s4065_s29 + $0x100] sm:$0xf] %vm1397_vm1, %v1463_v60  ;;  %v940_v26 = vpop.f32.mrf.mxu0  ;;  %v1101_v29 = vadd.f32 %v1100_v61, %v4056_v28 }
 0x285   : > { %1427 = vst.msk [vmem:[%s4065_s29 + $0x74] sm:$0xf] %vm1397_vm1, %v3296_v58  ;;  %v3360_v2 = vpack.c.bf16 %v937_v59, %v937_v59  ;;  %v941_v3 = vadd.f32 %v940_v26, %v4056_v28  ;;  %1520 = vrot.lane.b32.xlu1 %v3296_v58, %s3679_s8  ;;  %1582 = vrot.lane.b32.xlu0 %v3327_v39, %s3679_s8  ;;  %v1102_v4 = vpop.f32.mrf.mxu1 }
 0x286   : > { %3258 = vst.msk [vmem:[%s4065_s29 + $0x2f4] sm:$0xf] %vm1397_vm1, %v3392_v62  ;;  %v3329_v5 = vpack.c.bf16 %v1101_v29, %v1101_v29  ;;  %v942_v38 = vpop.f32.mrf.mxu0  ;;  %v1103_v37 = vadd.f32 %v1102_v4, %v4059_v9 }
 0x287   : > { %3226 = vst.msk [vmem:[%s4065_s29 + $0x274] sm:$0xf] %vm1397_vm1, %v3360_v2  ;;  %v3297_v6 = vpack.c.bf16 %v941_v3, %v941_v3  ;;  %v943_v7 = vadd.f32 %v942_v38, %v4059_v9  ;;  %v1465_v25 = vpop.permute.xlu1 %1464  ;;  %v1527_v8 = vpop.permute.xlu0 %1526 }
 0x288   : > { %1460 = vst.msk [vmem:[%s4065_s29 + $0xf8] sm:$0xf] %vm1397_vm1, %v3329_v5  ;;  %v3393_v12 = vpack.c.bf16 %v1103_v37, %v1103_v37  ;;  %3070 = vst.msk [vmem:[%s4065_s29 + $0x104] sm:$0xf] %vm1397_vm1, %v1465_v25  ;;  %v944_v0 = vpop.f32.mrf.mxu0  ;;  %v1104_v13 = vpop.f32.mrf.mxu1 }
 0x289   : > { %3101 = vst.msk [vmem:[%s4065_s29 + $0x180] sm:$0xf] %vm1397_vm1, %v1527_v8  ;;  %1428 = vst.msk [vmem:[%s4065_s29 + $0x78] sm:$0xf] %vm1397_vm1, %v3297_v6  ;;  %v3361_v14 = vpack.c.bf16 %v943_v7, %v943_v7  ;;  %v945_v15 = vadd.f32 %v944_v0, %v4056_v28  ;;  %v1105_v16 = vadd.f32 %v1104_v13, %v4056_v28  ;;  %1584 = vrot.lane.b32.xlu1 %v3328_v53, %s3679_s8 }
 0x28a   : > { %1522 = vrot.lane.b32.xlu0 %v3297_v6, %s3679_s8  ;;  %3259 = vst.msk [vmem:[%s4065_s29 + $0x2f8] sm:$0xf] %vm1397_vm1, %v3393_v12  ;;  %v946_v55 = vpop.f32.mrf.mxu0  ;;  %v1106_v17 = vpop.f32.mrf.mxu1 }
 0x28b   : > { %3227 = vst.msk [vmem:[%s4065_s29 + $0x278] sm:$0xf] %vm1397_vm1, %v3361_v14  ;;  %v3298_v56 = vpack.c.bf16 %v945_v15, %v945_v15  ;;  %v3330_v18 = vpack.c.bf16 %v1105_v16, %v1105_v16  ;;  %v947_v19 = vadd.f32 %v946_v55, %v4059_v9  ;;  %v1107_v28 = vadd.f32 %v1106_v17, %v4059_v9  ;;  %v1529_v20 = vpop.permute.xlu1 %1528  ;;  %v1467_v21 = vpop.permute.xlu0 %1466 }
 0x28c   : > { %3102 = vst.msk [vmem:[%s4065_s29 + $0x184] sm:$0xf] %vm1397_vm1, %v1529_v20  ;;  %3071 = vst.msk [vmem:[%s4065_s29 + $0x108] sm:$0xf] %vm1397_vm1, %v1467_v21  ;;  %v2040_v20 = vld [vmem:[%s4065_s29 + $0x8] sm:$0xff] (%p4895_p3)   ;;  %v2044_v21 = vld [vmem:[%s4065_s29 + $0x10] sm:$0xff] (%p4895_p3)  }
 0x28d   : > { %1429 = vst.msk [vmem:[%s4065_s29 + $0x7c] sm:$0xf] %vm1397_vm1, %v3298_v56  ;;  %1461 = vst.msk [vmem:[%s4065_s29 + $0xfc] sm:$0xf] %vm1397_vm1, %v3330_v18  ;;  %v3362_v47 = vpack.c.bf16 %v947_v19, %v947_v19  ;;  %v3394_v48 = vpack.c.bf16 %v1107_v28, %v1107_v28  ;;  %1524 = vrot.lane.b32.xlu1 %v3298_v56, %s3679_s8  ;;  %v2036_v28 = vld [vmem:[%s4065_s29] sm:$0xff] (%p4895_p3)  }
 0x28e   : > { %1586 = vrot.lane.b32.xlu0 %v3329_v5, %s3679_s8  ;;  %2037 = vst [vmem:[%s4658_s9] sm:$0xff] (%p4895_p3), %v2036_v28   ;;  %2041 = vst [vmem:[%s4658_s9 + $0x8] sm:$0xff] (%p4895_p3), %v2040_v20   ;;  %v2292_v28 = vld [vmem:[%s4065_s29 + $0x200] sm:$0xff] (%p4895_p3)  }
 0x28f   : > { %3228 = vst.msk [vmem:[%s4065_s29 + $0x27c] sm:$0xf] %vm1397_vm1, %v3362_v47  ;;  %3260 = vst.msk [vmem:[%s4065_s29 + $0x2fc] sm:$0xf] %vm1397_vm1, %v3394_v48  ;;  %v1469_v9 = vpop.permute.xlu1 %1468  ;;  %v1531_v24 = vpop.permute.xlu0 %1530  ;;  %v2048_v47 = vld [vmem:[%s4065_s29 + $0x18] sm:$0xff] (%p4895_p3)   ;;  %v2052_v48 = vld [vmem:[%s4065_s29 + $0x20] sm:$0xff] (%p4895_p3)  }
 0x290   : > { %3072 = vst.msk [vmem:[%s4065_s29 + $0x10c] sm:$0xf] %vm1397_vm1, %v1469_v9  ;;  %3103 = vst.msk [vmem:[%s4065_s29 + $0x188] sm:$0xf] %vm1397_vm1, %v1531_v24  ;;  %v2056_v9 = vld [vmem:[%s4065_s29 + $0x28] sm:$0xff] (%p4895_p3)   ;;  %v2060_v24 = vld [vmem:[%s4065_s29 + $0x30] sm:$0xff] (%p4895_p3)  }
 0x291   : > { %1588 = vrot.lane.b32.xlu1 %v3330_v18, %s3679_s8  ;;  %2045 = vst [vmem:[%s4658_s9 + $0x10] sm:$0xff] (%p4895_p3), %v2044_v21   ;;  %2049 = vst [vmem:[%s4658_s9 + $0x18] sm:$0xff] (%p4895_p3), %v2048_v47   ;;  %v2296_v20 = vld [vmem:[%s4065_s29 + $0x208] sm:$0xff] (%p4895_p3)  }
 0x292   : > { %2053 = vst [vmem:[%s4658_s9 + $0x20] sm:$0xff] (%p4895_p3), %v2052_v48   ;;  %2057 = vst [vmem:[%s4658_s9 + $0x28] sm:$0xff] (%p4895_p3), %v2056_v9   ;;  %v2300_v21 = vld [vmem:[%s4065_s29 + $0x210] sm:$0xff] (%p4895_p3)   ;;  %v2304_v47 = vld [vmem:[%s4065_s29 + $0x218] sm:$0xff] (%p4895_p3)  }
 0x293   : > { %v1533_v27 = vpop.permute.xlu1 %1532  ;;  %v1471_v30 = vpop.permute.xlu0 %1470  ;;  %2061 = vst [vmem:[%s4658_s9 + $0x30] sm:$0xff] (%p4895_p3), %v2060_v24   ;;  %2293 = vst [vmem:[%s4658_s9 + $0x400] sm:$0xff] (%p4895_p3), %v2292_v28   ;;  %v2308_v48 = vld [vmem:[%s4065_s29 + $0x220] sm:$0xff] (%p4895_p3)   ;;  %v2312_v9 = vld [vmem:[%s4065_s29 + $0x228] sm:$0xff] (%p4895_p3)  }
 0x294   : > { %3104 = vst.msk [vmem:[%s4065_s29 + $0x18c] sm:$0xf] %vm1397_vm1, %v1533_v27  ;;  %3073 = vst.msk [vmem:[%s4065_s29 + $0x110] sm:$0xf] %vm1397_vm1, %v1471_v30  ;;  %v2064_v27 = vld [vmem:[%s4065_s29 + $0x38] sm:$0xff] (%p4895_p3)   ;;  %v2068_v30 = vld [vmem:[%s4065_s29 + $0x40] sm:$0xff] (%p4895_p3)  }
 0x295   : > { %2065 = vst [vmem:[%s4658_s9 + $0x38] sm:$0xff] (%p4895_p3), %v2064_v27   ;;  %2069 = vst [vmem:[%s4658_s9 + $0x40] sm:$0xff] (%p4895_p3), %v2068_v30   ;;  %v2316_v24 = vld [vmem:[%s4065_s29 + $0x230] sm:$0xff] (%p4895_p3)   ;;  %v2320_v27 = vld [vmem:[%s4065_s29 + $0x238] sm:$0xff] (%p4895_p3)  }
 0x296   : > { %2297 = vst [vmem:[%s4658_s9 + $0x408] sm:$0xff] (%p4895_p3), %v2296_v20   ;;  %2301 = vst [vmem:[%s4658_s9 + $0x410] sm:$0xff] (%p4895_p3), %v2300_v21   ;;  %v2324_v30 = vld [vmem:[%s4065_s29 + $0x240] sm:$0xff] (%p4895_p3)  }
 0x297   : > { %v1473_v31 = vpop.permute.xlu1 %1472  ;;  %v1535_v10 = vpop.permute.xlu0 %1534  ;;  %2305 = vst [vmem:[%s4658_s9 + $0x418] sm:$0xff] (%p4895_p3), %v2304_v47   ;;  %2309 = vst [vmem:[%s4658_s9 + $0x420] sm:$0xff] (%p4895_p3), %v2308_v48  }
 0x298   : > { %3074 = vst.msk [vmem:[%s4065_s29 + $0x114] sm:$0xf] %vm1397_vm1, %v1473_v31  ;;  %3105 = vst.msk [vmem:[%s4065_s29 + $0x190] sm:$0xf] %vm1397_vm1, %v1535_v10  ;;  %v2072_v31 = vld [vmem:[%s4065_s29 + $0x48] sm:$0xff] (%p4895_p3)   ;;  %v2076_v10 = vld [vmem:[%s4065_s29 + $0x50] sm:$0xff] (%p4895_p3)  }
 0x299   : > { %2073 = vst [vmem:[%s4658_s9 + $0x48] sm:$0xff] (%p4895_p3), %v2072_v31   ;;  %2077 = vst [vmem:[%s4658_s9 + $0x50] sm:$0xff] (%p4895_p3), %v2076_v10   ;;  %v2328_v31 = vld [vmem:[%s4065_s29 + $0x248] sm:$0xff] (%p4895_p3)   ;;  %v2332_v10 = vld [vmem:[%s4065_s29 + $0x250] sm:$0xff] (%p4895_p3)  }
 0x29a   : > { %2313 = vst [vmem:[%s4658_s9 + $0x428] sm:$0xff] (%p4895_p3), %v2312_v9   ;;  %2317 = vst [vmem:[%s4658_s9 + $0x430] sm:$0xff] (%p4895_p3), %v2316_v24  }
 0x29b   : > { %v1537_v11 = vpop.permute.xlu1 %1536  ;;  %v1475_v32 = vpop.permute.xlu0 %1474  ;;  %2321 = vst [vmem:[%s4658_s9 + $0x438] sm:$0xff] (%p4895_p3), %v2320_v27   ;;  %2325 = vst [vmem:[%s4658_s9 + $0x440] sm:$0xff] (%p4895_p3), %v2324_v30  }
 0x29c   : > { %3106 = vst.msk [vmem:[%s4065_s29 + $0x194] sm:$0xf] %vm1397_vm1, %v1537_v11  ;;  %3075 = vst.msk [vmem:[%s4065_s29 + $0x118] sm:$0xf] %vm1397_vm1, %v1475_v32  ;;  %v2080_v11 = vld [vmem:[%s4065_s29 + $0x58] sm:$0xff] (%p4895_p3)   ;;  %v2084_v32 = vld [vmem:[%s4065_s29 + $0x60] sm:$0xff] (%p4895_p3)  }
 0x29d   : > { %2081 = vst [vmem:[%s4658_s9 + $0x58] sm:$0xff] (%p4895_p3), %v2080_v11   ;;  %2085 = vst [vmem:[%s4658_s9 + $0x60] sm:$0xff] (%p4895_p3), %v2084_v32   ;;  %v2336_v11 = vld [vmem:[%s4065_s29 + $0x258] sm:$0xff] (%p4895_p3)   ;;  %v2340_v32 = vld [vmem:[%s4065_s29 + $0x260] sm:$0xff] (%p4895_p3)  }
 0x29e   : > { %2329 = vst [vmem:[%s4658_s9 + $0x448] sm:$0xff] (%p4895_p3), %v2328_v31   ;;  %2333 = vst [vmem:[%s4658_s9 + $0x450] sm:$0xff] (%p4895_p3), %v2332_v10  }
 0x29f   : > { %v1477_v33 = vpop.permute.xlu1 %1476  ;;  %v1539_v34 = vpop.permute.xlu0 %1538  ;;  %2337 = vst [vmem:[%s4658_s9 + $0x458] sm:$0xff] (%p4895_p3), %v2336_v11   ;;  %2341 = vst [vmem:[%s4658_s9 + $0x460] sm:$0xff] (%p4895_p3), %v2340_v32  }
 0x2a0   : > { %3076 = vst.msk [vmem:[%s4065_s29 + $0x11c] sm:$0xf] %vm1397_vm1, %v1477_v33  ;;  %3107 = vst.msk [vmem:[%s4065_s29 + $0x198] sm:$0xf] %vm1397_vm1, %v1539_v34  ;;  %v2088_v33 = vld [vmem:[%s4065_s29 + $0x68] sm:$0xff] (%p4895_p3)   ;;  %v2092_v34 = vld [vmem:[%s4065_s29 + $0x70] sm:$0xff] (%p4895_p3)  }
 0x2a1   : > { %2089 = vst [vmem:[%s4658_s9 + $0x68] sm:$0xff] (%p4895_p3), %v2088_v33   ;;  %2093 = vst [vmem:[%s4658_s9 + $0x70] sm:$0xff] (%p4895_p3), %v2092_v34   ;;  %v2344_v33 = vld [vmem:[%s4065_s29 + $0x268] sm:$0xff] (%p4895_p3)   ;;  %v2348_v34 = vld [vmem:[%s4065_s29 + $0x270] sm:$0xff] (%p4895_p3)  }
 0x2a2   : > { %2345 = vst [vmem:[%s4658_s9 + $0x468] sm:$0xff] (%p4895_p3), %v2344_v33   ;;  %2349 = vst [vmem:[%s4658_s9 + $0x470] sm:$0xff] (%p4895_p3), %v2348_v34  }
 0x2a3   : > { %v1541_v63 = vpop.permute.xlu1 %1540  ;;  %v1479_v1 = vpop.permute.xlu0 %1478 }
 0x2a4   : > { %3108 = vst.msk [vmem:[%s4065_s29 + $0x19c] sm:$0xf] %vm1397_vm1, %v1541_v63  ;;  %3077 = vst.msk [vmem:[%s4065_s29 + $0x120] sm:$0xf] %vm1397_vm1, %v1479_v1  ;;  %v2096_v63 = vld [vmem:[%s4065_s29 + $0x78] sm:$0xff] (%p4895_p3)   ;;  %v2100_v1 = vld [vmem:[%s4065_s29 + $0x80] sm:$0xff] (%p4895_p3)  }
 0x2a5   : > { %2097 = vst [vmem:[%s4658_s9 + $0x78] sm:$0xff] (%p4895_p3), %v2096_v63   ;;  %2101 = vst [vmem:[%s4658_s9 + $0x80] sm:$0xff] (%p4895_p3), %v2100_v1   ;;  %v2352_v63 = vld [vmem:[%s4065_s29 + $0x278] sm:$0xff] (%p4895_p3)   ;;  %v2356_v1 = vld [vmem:[%s4065_s29 + $0x280] sm:$0xff] (%p4895_p3)  }
 0x2a6   : > { %2353 = vst [vmem:[%s4658_s9 + $0x478] sm:$0xff] (%p4895_p3), %v2352_v63   ;;  %2357 = vst [vmem:[%s4658_s9 + $0x480] sm:$0xff] (%p4895_p3), %v2356_v1  }
 0x2a7   : > { %v1481_v22 = vpop.permute.xlu1 %1480  ;;  %v1543_v23 = vpop.permute.xlu0 %1542 }
 0x2a8   : > { %3078 = vst.msk [vmem:[%s4065_s29 + $0x124] sm:$0xf] %vm1397_vm1, %v1481_v22  ;;  %3109 = vst.msk [vmem:[%s4065_s29 + $0x1a0] sm:$0xf] %vm1397_vm1, %v1543_v23  ;;  %v2104_v22 = vld [vmem:[%s4065_s29 + $0x88] sm:$0xff] (%p4895_p3)   ;;  %v2108_v23 = vld [vmem:[%s4065_s29 + $0x90] sm:$0xff] (%p4895_p3)  }
 0x2a9   : > { %2105 = vst [vmem:[%s4658_s9 + $0x88] sm:$0xff] (%p4895_p3), %v2104_v22   ;;  %2109 = vst [vmem:[%s4658_s9 + $0x90] sm:$0xff] (%p4895_p3), %v2108_v23   ;;  %v2360_v22 = vld [vmem:[%s4065_s29 + $0x288] sm:$0xff] (%p4895_p3)   ;;  %v2364_v23 = vld [vmem:[%s4065_s29 + $0x290] sm:$0xff] (%p4895_p3)  }
 0x2aa   : > { %2361 = vst [vmem:[%s4658_s9 + $0x488] sm:$0xff] (%p4895_p3), %v2360_v22   ;;  %2365 = vst [vmem:[%s4658_s9 + $0x490] sm:$0xff] (%p4895_p3), %v2364_v23  }
 0x2ab   : > { %v1545_v35 = vpop.permute.xlu1 %1544  ;;  %v1483_v36 = vpop.permute.xlu0 %1482 }
 0x2ac   : > { %3110 = vst.msk [vmem:[%s4065_s29 + $0x1a4] sm:$0xf] %vm1397_vm1, %v1545_v35  ;;  %3079 = vst.msk [vmem:[%s4065_s29 + $0x128] sm:$0xf] %vm1397_vm1, %v1483_v36  ;;  %v2112_v35 = vld [vmem:[%s4065_s29 + $0x98] sm:$0xff] (%p4895_p3)   ;;  %v2116_v36 = vld [vmem:[%s4065_s29 + $0xa0] sm:$0xff] (%p4895_p3)  }
 0x2ad   : > { %2113 = vst [vmem:[%s4658_s9 + $0x98] sm:$0xff] (%p4895_p3), %v2112_v35   ;;  %2117 = vst [vmem:[%s4658_s9 + $0xa0] sm:$0xff] (%p4895_p3), %v2116_v36   ;;  %v2368_v35 = vld [vmem:[%s4065_s29 + $0x298] sm:$0xff] (%p4895_p3)   ;;  %v2372_v36 = vld [vmem:[%s4065_s29 + $0x2a0] sm:$0xff] (%p4895_p3)  }
 0x2ae   : > { %2369 = vst [vmem:[%s4658_s9 + $0x498] sm:$0xff] (%p4895_p3), %v2368_v35   ;;  %2373 = vst [vmem:[%s4658_s9 + $0x4a0] sm:$0xff] (%p4895_p3), %v2372_v36  }
 0x2af   : > { %v1485_v39 = vpop.permute.xlu1 %1484  ;;  %v1547_v40 = vpop.permute.xlu0 %1546 }
 0x2b0   : > { %3080 = vst.msk [vmem:[%s4065_s29 + $0x12c] sm:$0xf] %vm1397_vm1, %v1485_v39  ;;  %3111 = vst.msk [vmem:[%s4065_s29 + $0x1a8] sm:$0xf] %vm1397_vm1, %v1547_v40  ;;  %v2120_v39 = vld [vmem:[%s4065_s29 + $0xa8] sm:$0xff] (%p4895_p3)   ;;  %v2124_v40 = vld [vmem:[%s4065_s29 + $0xb0] sm:$0xff] (%p4895_p3)  }
 0x2b1   : > { %2121 = vst [vmem:[%s4658_s9 + $0xa8] sm:$0xff] (%p4895_p3), %v2120_v39   ;;  %2125 = vst [vmem:[%s4658_s9 + $0xb0] sm:$0xff] (%p4895_p3), %v2124_v40   ;;  %v2376_v39 = vld [vmem:[%s4065_s29 + $0x2a8] sm:$0xff] (%p4895_p3)   ;;  %v2380_v40 = vld [vmem:[%s4065_s29 + $0x2b0] sm:$0xff] (%p4895_p3)  }
 0x2b2   : > { %2377 = vst [vmem:[%s4658_s9 + $0x4a8] sm:$0xff] (%p4895_p3), %v2376_v39   ;;  %2381 = vst [vmem:[%s4658_s9 + $0x4b0] sm:$0xff] (%p4895_p3), %v2380_v40  }
 0x2b3   : > { %v1549_v41 = vpop.permute.xlu1 %1548  ;;  %v1487_v42 = vpop.permute.xlu0 %1486 }
 0x2b4   : > { %3112 = vst.msk [vmem:[%s4065_s29 + $0x1ac] sm:$0xf] %vm1397_vm1, %v1549_v41  ;;  %3081 = vst.msk [vmem:[%s4065_s29 + $0x130] sm:$0xf] %vm1397_vm1, %v1487_v42  ;;  %v2128_v41 = vld [vmem:[%s4065_s29 + $0xb8] sm:$0xff] (%p4895_p3)   ;;  %v2132_v42 = vld [vmem:[%s4065_s29 + $0xc0] sm:$0xff] (%p4895_p3)  }
 0x2b5   : > { %2129 = vst [vmem:[%s4658_s9 + $0xb8] sm:$0xff] (%p4895_p3), %v2128_v41   ;;  %2133 = vst [vmem:[%s4658_s9 + $0xc0] sm:$0xff] (%p4895_p3), %v2132_v42   ;;  %v2384_v41 = vld [vmem:[%s4065_s29 + $0x2b8] sm:$0xff] (%p4895_p3)   ;;  %v2388_v42 = vld [vmem:[%s4065_s29 + $0x2c0] sm:$0xff] (%p4895_p3)  }
 0x2b6   : > { %2385 = vst [vmem:[%s4658_s9 + $0x4b8] sm:$0xff] (%p4895_p3), %v2384_v41   ;;  %2389 = vst [vmem:[%s4658_s9 + $0x4c0] sm:$0xff] (%p4895_p3), %v2388_v42  }
 0x2b7   : > { %v1489_v43 = vpop.permute.xlu1 %1488  ;;  %v1551_v44 = vpop.permute.xlu0 %1550 }
 0x2b8   : > { %3082 = vst.msk [vmem:[%s4065_s29 + $0x134] sm:$0xf] %vm1397_vm1, %v1489_v43  ;;  %3113 = vst.msk [vmem:[%s4065_s29 + $0x1b0] sm:$0xf] %vm1397_vm1, %v1551_v44  ;;  %v2136_v43 = vld [vmem:[%s4065_s29 + $0xc8] sm:$0xff] (%p4895_p3)   ;;  %v2140_v44 = vld [vmem:[%s4065_s29 + $0xd0] sm:$0xff] (%p4895_p3)  }
 0x2b9   : > { %2137 = vst [vmem:[%s4658_s9 + $0xc8] sm:$0xff] (%p4895_p3), %v2136_v43   ;;  %2141 = vst [vmem:[%s4658_s9 + $0xd0] sm:$0xff] (%p4895_p3), %v2140_v44   ;;  %v2392_v43 = vld [vmem:[%s4065_s29 + $0x2c8] sm:$0xff] (%p4895_p3)   ;;  %v2396_v44 = vld [vmem:[%s4065_s29 + $0x2d0] sm:$0xff] (%p4895_p3)  }
 0x2ba   : > { %2393 = vst [vmem:[%s4658_s9 + $0x4c8] sm:$0xff] (%p4895_p3), %v2392_v43   ;;  %2397 = vst [vmem:[%s4658_s9 + $0x4d0] sm:$0xff] (%p4895_p3), %v2396_v44  }
 0x2bb   : > { %v1553_v45 = vpop.permute.xlu1 %1552  ;;  %v1491_v46 = vpop.permute.xlu0 %1490 }
 0x2bc   : > { %3114 = vst.msk [vmem:[%s4065_s29 + $0x1b4] sm:$0xf] %vm1397_vm1, %v1553_v45  ;;  %3083 = vst.msk [vmem:[%s4065_s29 + $0x138] sm:$0xf] %vm1397_vm1, %v1491_v46  ;;  %v2144_v45 = vld [vmem:[%s4065_s29 + $0xd8] sm:$0xff] (%p4895_p3)   ;;  %v2148_v46 = vld [vmem:[%s4065_s29 + $0xe0] sm:$0xff] (%p4895_p3)  }
 0x2bd   : > { %2145 = vst [vmem:[%s4658_s9 + $0xd8] sm:$0xff] (%p4895_p3), %v2144_v45   ;;  %2149 = vst [vmem:[%s4658_s9 + $0xe0] sm:$0xff] (%p4895_p3), %v2148_v46   ;;  %v2400_v45 = vld [vmem:[%s4065_s29 + $0x2d8] sm:$0xff] (%p4895_p3)   ;;  %v2404_v46 = vld [vmem:[%s4065_s29 + $0x2e0] sm:$0xff] (%p4895_p3)  }
 0x2be   : > { %2401 = vst [vmem:[%s4658_s9 + $0x4d8] sm:$0xff] (%p4895_p3), %v2400_v45   ;;  %2405 = vst [vmem:[%s4658_s9 + $0x4e0] sm:$0xff] (%p4895_p3), %v2404_v46  }
 0x2bf   : > { %v1493_v49 = vpop.permute.xlu1 %1492  ;;  %v1555_v50 = vpop.permute.xlu0 %1554 }
 0x2c0   : > { %3084 = vst.msk [vmem:[%s4065_s29 + $0x13c] sm:$0xf] %vm1397_vm1, %v1493_v49  ;;  %3115 = vst.msk [vmem:[%s4065_s29 + $0x1b8] sm:$0xf] %vm1397_vm1, %v1555_v50  ;;  %v2152_v49 = vld [vmem:[%s4065_s29 + $0xe8] sm:$0xff] (%p4895_p3)   ;;  %v2156_v50 = vld [vmem:[%s4065_s29 + $0xf0] sm:$0xff] (%p4895_p3)  }
 0x2c1   : > { %2153 = vst [vmem:[%s4658_s9 + $0xe8] sm:$0xff] (%p4895_p3), %v2152_v49   ;;  %2157 = vst [vmem:[%s4658_s9 + $0xf0] sm:$0xff] (%p4895_p3), %v2156_v50   ;;  %v2408_v49 = vld [vmem:[%s4065_s29 + $0x2e8] sm:$0xff] (%p4895_p3)   ;;  %v2412_v50 = vld [vmem:[%s4065_s29 + $0x2f0] sm:$0xff] (%p4895_p3)  }
 0x2c2   : > { %2409 = vst [vmem:[%s4658_s9 + $0x4e8] sm:$0xff] (%p4895_p3), %v2408_v49   ;;  %2413 = vst [vmem:[%s4658_s9 + $0x4f0] sm:$0xff] (%p4895_p3), %v2412_v50  }
 0x2c3   : > { %v1557_v51 = vpop.permute.xlu1 %1556  ;;  %v1495_v52 = vpop.permute.xlu0 %1494 }
 0x2c4   : > { %3116 = vst.msk [vmem:[%s4065_s29 + $0x1bc] sm:$0xf] %vm1397_vm1, %v1557_v51  ;;  %3085 = vst.msk [vmem:[%s4065_s29 + $0x140] sm:$0xf] %vm1397_vm1, %v1495_v52  ;;  %v2160_v51 = vld [vmem:[%s4065_s29 + $0xf8] sm:$0xff] (%p4895_p3)   ;;  %v2164_v52 = vld [vmem:[%s4065_s29 + $0x100] sm:$0xff] (%p4895_p3)  }
 0x2c5   : > { %2161 = vst [vmem:[%s4658_s9 + $0xf8] sm:$0xff] (%p4895_p3), %v2160_v51   ;;  %2165 = vst [vmem:[%s4658_s9 + $0x200] sm:$0xff] (%p4895_p3), %v2164_v52   ;;  %v2416_v51 = vld [vmem:[%s4065_s29 + $0x2f8] sm:$0xff] (%p4895_p3)  }
 0x2c6   : > { %2417 = vst [vmem:[%s4658_s9 + $0x4f8] sm:$0xff] (%p4895_p3), %v2416_v51  }
 0x2c7   : > { %v1497_v53 = vpop.permute.xlu1 %1496  ;;  %v1559_v54 = vpop.permute.xlu0 %1558 }
 0x2c8   : > { %3086 = vst.msk [vmem:[%s4065_s29 + $0x144] sm:$0xf] %vm1397_vm1, %v1497_v53  ;;  %3117 = vst.msk [vmem:[%s4065_s29 + $0x1c0] sm:$0xf] %vm1397_vm1, %v1559_v54  ;;  %v2168_v53 = vld [vmem:[%s4065_s29 + $0x108] sm:$0xff] (%p4895_p3)   ;;  %v2172_v54 = vld [vmem:[%s4065_s29 + $0x110] sm:$0xff] (%p4895_p3)  }
 0x2c9   : > { %2169 = vst [vmem:[%s4658_s9 + $0x208] sm:$0xff] (%p4895_p3), %v2168_v53   ;;  %2173 = vst [vmem:[%s4658_s9 + $0x210] sm:$0xff] (%p4895_p3), %v2172_v54  }
 0x2cb   : > { %v1561_v57 = vpop.permute.xlu1 %1560  ;;  %v1499_v58 = vpop.permute.xlu0 %1498 }
 0x2cc   : > { %3118 = vst.msk [vmem:[%s4065_s29 + $0x1c4] sm:$0xf] %vm1397_vm1, %v1561_v57  ;;  %3087 = vst.msk [vmem:[%s4065_s29 + $0x148] sm:$0xf] %vm1397_vm1, %v1499_v58  ;;  %v2176_v57 = vld [vmem:[%s4065_s29 + $0x118] sm:$0xff] (%p4895_p3)   ;;  %v2180_v58 = vld [vmem:[%s4065_s29 + $0x120] sm:$0xff] (%p4895_p3)  }
 0x2cd   : > { %2177 = vst [vmem:[%s4658_s9 + $0x218] sm:$0xff] (%p4895_p3), %v2176_v57   ;;  %2181 = vst [vmem:[%s4658_s9 + $0x220] sm:$0xff] (%p4895_p3), %v2180_v58  }
 0x2cf   : > { %v1501_v59 = vpop.permute.xlu1 %1500  ;;  %v1563_v60 = vpop.permute.xlu0 %1562 }
 0x2d0   : > { %3088 = vst.msk [vmem:[%s4065_s29 + $0x14c] sm:$0xf] %vm1397_vm1, %v1501_v59  ;;  %3119 = vst.msk [vmem:[%s4065_s29 + $0x1c8] sm:$0xf] %vm1397_vm1, %v1563_v60  ;;  %v2184_v59 = vld [vmem:[%s4065_s29 + $0x128] sm:$0xff] (%p4895_p3)   ;;  %v2188_v60 = vld [vmem:[%s4065_s29 + $0x130] sm:$0xff] (%p4895_p3)  }
 0x2d1   : > { %2185 = vst [vmem:[%s4658_s9 + $0x228] sm:$0xff] (%p4895_p3), %v2184_v59   ;;  %2189 = vst [vmem:[%s4658_s9 + $0x230] sm:$0xff] (%p4895_p3), %v2188_v60  }
 0x2d3   : > { %v1565_v61 = vpop.permute.xlu1 %1564  ;;  %v1503_v62 = vpop.permute.xlu0 %1502 }
 0x2d4   : > { %3120 = vst.msk [vmem:[%s4065_s29 + $0x1cc] sm:$0xf] %vm1397_vm1, %v1565_v61  ;;  %3089 = vst.msk [vmem:[%s4065_s29 + $0x150] sm:$0xf] %vm1397_vm1, %v1503_v62  ;;  %v2192_v61 = vld [vmem:[%s4065_s29 + $0x138] sm:$0xff] (%p4895_p3)   ;;  %v2196_v62 = vld [vmem:[%s4065_s29 + $0x140] sm:$0xff] (%p4895_p3)  }
 0x2d5   : > { %2193 = vst [vmem:[%s4658_s9 + $0x238] sm:$0xff] (%p4895_p3), %v2192_v61   ;;  %2197 = vst [vmem:[%s4658_s9 + $0x240] sm:$0xff] (%p4895_p3), %v2196_v62  }
 0x2d7   : > { %v1505_v26 = vpop.permute.xlu1 %1504  ;;  %v1567_v29 = vpop.permute.xlu0 %1566 }
 0x2d8   : > { %3090 = vst.msk [vmem:[%s4065_s29 + $0x154] sm:$0xf] %vm1397_vm1, %v1505_v26  ;;  %3121 = vst.msk [vmem:[%s4065_s29 + $0x1d0] sm:$0xf] %vm1397_vm1, %v1567_v29  ;;  %v2200_v26 = vld [vmem:[%s4065_s29 + $0x148] sm:$0xff] (%p4895_p3)  }
 0x2d9   : > { %2201 = vst [vmem:[%s4658_s9 + $0x248] sm:$0xff] (%p4895_p3), %v2200_v26  }
 0x2db   : > { %v1569_v2 = vpop.permute.xlu1 %1568  ;;  %v1507_v3 = vpop.permute.xlu0 %1506 }
 0x2dc   : > { %3122 = vst.msk [vmem:[%s4065_s29 + $0x1d4] sm:$0xf] %vm1397_vm1, %v1569_v2  ;;  %3091 = vst.msk [vmem:[%s4065_s29 + $0x158] sm:$0xf] %vm1397_vm1, %v1507_v3 }
 0x2df   : > { %v1509_v4 = vpop.permute.xlu1 %1508  ;;  %v1571_v5 = vpop.permute.xlu0 %1570  ;;  %v2204_v29 = vld [vmem:[%s4065_s29 + $0x150] sm:$0xff] (%p4895_p3)  }
 0x2e0   : > { %3092 = vst.msk [vmem:[%s4065_s29 + $0x15c] sm:$0xf] %vm1397_vm1, %v1509_v4  ;;  %3123 = vst.msk [vmem:[%s4065_s29 + $0x1d8] sm:$0xf] %vm1397_vm1, %v1571_v5 }
 0x2e1   : > { %2205 = vst [vmem:[%s4658_s9 + $0x250] sm:$0xff] (%p4895_p3), %v2204_v29  }
 0x2e3   : > { %v1573_v38 = vpop.permute.xlu1 %1572  ;;  %v1511_v37 = vpop.permute.xlu0 %1510 }
 0x2e4   : > { %3124 = vst.msk [vmem:[%s4065_s29 + $0x1dc] sm:$0xf] %vm1397_vm1, %v1573_v38  ;;  %3093 = vst.msk [vmem:[%s4065_s29 + $0x160] sm:$0xf] %vm1397_vm1, %v1511_v37  ;;  %v2228_v37 = vld [vmem:[%s4065_s29 + $0x180] sm:$0xff] (%p4895_p3)  }
 0x2e5   : > { %2229 = vst [vmem:[%s4658_s9 + $0x280] sm:$0xff] (%p4895_p3), %v2228_v37  }
 0x2e7   : > { %v1513_v6 = vpop.permute.xlu1 %1512  ;;  %v1575_v7 = vpop.permute.xlu0 %1574  ;;  %v2208_v2 = vld [vmem:[%s4065_s29 + $0x158] sm:$0xff] (%p4895_p3)  }
 0x2e8   : > { %3094 = vst.msk [vmem:[%s4065_s29 + $0x164] sm:$0xf] %vm1397_vm1, %v1513_v6  ;;  %3125 = vst.msk [vmem:[%s4065_s29 + $0x1e0] sm:$0xf] %vm1397_vm1, %v1575_v7  ;;  %v2232_v6 = vld [vmem:[%s4065_s29 + $0x188] sm:$0xff] (%p4895_p3)   ;;  %v2236_v7 = vld [vmem:[%s4065_s29 + $0x190] sm:$0xff] (%p4895_p3)  }
 0x2e9   : > { %2209 = vst [vmem:[%s4658_s9 + $0x258] sm:$0xff] (%p4895_p3), %v2208_v2   ;;  %2233 = vst [vmem:[%s4658_s9 + $0x288] sm:$0xff] (%p4895_p3), %v2232_v6  }
 0x2ea   : > { %2237 = vst [vmem:[%s4658_s9 + $0x290] sm:$0xff] (%p4895_p3), %v2236_v7  }
 0x2eb   : > { %v1577_v25 = vpop.permute.xlu1 %1576  ;;  %v1515_v8 = vpop.permute.xlu0 %1514 }
 0x2ec   : > { %3126 = vst.msk [vmem:[%s4065_s29 + $0x1e4] sm:$0xf] %vm1397_vm1, %v1577_v25  ;;  %3095 = vst.msk [vmem:[%s4065_s29 + $0x168] sm:$0xf] %vm1397_vm1, %v1515_v8  ;;  %v2240_v25 = vld [vmem:[%s4065_s29 + $0x198] sm:$0xff] (%p4895_p3)   ;;  %v2244_v8 = vld [vmem:[%s4065_s29 + $0x1a0] sm:$0xff] (%p4895_p3)  }
 0x2ed   : > { %2241 = vst [vmem:[%s4658_s9 + $0x298] sm:$0xff] (%p4895_p3), %v2240_v25   ;;  %2245 = vst [vmem:[%s4658_s9 + $0x2a0] sm:$0xff] (%p4895_p3), %v2244_v8  }
 0x2ef   : > { %v1517_v12 = vpop.permute.xlu1 %1516  ;;  %v1579_v0 = vpop.permute.xlu0 %1578  ;;  %v2212_v3 = vld [vmem:[%s4065_s29 + $0x160] sm:$0xff] (%p4895_p3)  }
 0x2f0   : > { %3096 = vst.msk [vmem:[%s4065_s29 + $0x16c] sm:$0xf] %vm1397_vm1, %v1517_v12  ;;  %3127 = vst.msk [vmem:[%s4065_s29 + $0x1e8] sm:$0xf] %vm1397_vm1, %v1579_v0  ;;  %v2248_v12 = vld [vmem:[%s4065_s29 + $0x1a8] sm:$0xff] (%p4895_p3)   ;;  %v2252_v0 = vld [vmem:[%s4065_s29 + $0x1b0] sm:$0xff] (%p4895_p3)  }
 0x2f1   : > { %2213 = vst [vmem:[%s4658_s9 + $0x260] sm:$0xff] (%p4895_p3), %v2212_v3   ;;  %2249 = vst [vmem:[%s4658_s9 + $0x2a8] sm:$0xff] (%p4895_p3), %v2248_v12  }
 0x2f2   : > { %2253 = vst [vmem:[%s4658_s9 + $0x2b0] sm:$0xff] (%p4895_p3), %v2252_v0  }
 0x2f3   : > { %v1581_v13 = vpop.permute.xlu1 %1580  ;;  %v1519_v14 = vpop.permute.xlu0 %1518 }
 0x2f4   : > { %3128 = vst.msk [vmem:[%s4065_s29 + $0x1ec] sm:$0xf] %vm1397_vm1, %v1581_v13  ;;  %3097 = vst.msk [vmem:[%s4065_s29 + $0x170] sm:$0xf] %vm1397_vm1, %v1519_v14  ;;  %v2256_v13 = vld [vmem:[%s4065_s29 + $0x1b8] sm:$0xff] (%p4895_p3)   ;;  %v2260_v14 = vld [vmem:[%s4065_s29 + $0x1c0] sm:$0xff] (%p4895_p3)  }
 0x2f5   : > { %2257 = vst [vmem:[%s4658_s9 + $0x2b8] sm:$0xff] (%p4895_p3), %v2256_v13   ;;  %2261 = vst [vmem:[%s4658_s9 + $0x2c0] sm:$0xff] (%p4895_p3), %v2260_v14  }
 0x2f7   : > { %v1521_v15 = vpop.permute.xlu1 %1520  ;;  %v1583_v16 = vpop.permute.xlu0 %1582  ;;  %v2216_v4 = vld [vmem:[%s4065_s29 + $0x168] sm:$0xff] (%p4895_p3)  }
 0x2f8   : > { %3098 = vst.msk [vmem:[%s4065_s29 + $0x174] sm:$0xf] %vm1397_vm1, %v1521_v15  ;;  %3129 = vst.msk [vmem:[%s4065_s29 + $0x1f0] sm:$0xf] %vm1397_vm1, %v1583_v16  ;;  %v2264_v15 = vld [vmem:[%s4065_s29 + $0x1c8] sm:$0xff] (%p4895_p3)   ;;  %v2268_v16 = vld [vmem:[%s4065_s29 + $0x1d0] sm:$0xff] (%p4895_p3)  }
 0x2f9   : > { %2217 = vst [vmem:[%s4658_s9 + $0x268] sm:$0xff] (%p4895_p3), %v2216_v4   ;;  %2265 = vst [vmem:[%s4658_s9 + $0x2c8] sm:$0xff] (%p4895_p3), %v2264_v15  }
 0x2fa   : > { %2269 = vst [vmem:[%s4658_s9 + $0x2d0] sm:$0xff] (%p4895_p3), %v2268_v16  }
 0x2fb   : > { %v1585_v55 = vpop.permute.xlu1 %1584 }
 0x2fc   : > { %v1523_v17 = vpop.permute.xlu0 %1522  ;;  %3130 = vst.msk [vmem:[%s4065_s29 + $0x1f4] sm:$0xf] %vm1397_vm1, %v1585_v55  ;;  %v2272_v55 = vld [vmem:[%s4065_s29 + $0x1d8] sm:$0xff] (%p4895_p3)  }
 0x2fd   : > { %3099 = vst.msk [vmem:[%s4065_s29 + $0x178] sm:$0xf] %vm1397_vm1, %v1523_v17  ;;  %2273 = vst [vmem:[%s4658_s9 + $0x2d8] sm:$0xff] (%p4895_p3), %v2272_v55   ;;  %v2276_v17 = vld [vmem:[%s4065_s29 + $0x1e0] sm:$0xff] (%p4895_p3)  }
 0x2fe   : > { %2277 = vst [vmem:[%s4658_s9 + $0x2e0] sm:$0xff] (%p4895_p3), %v2276_v17  }
 0x2ff   : > { %v1525_v56 = vpop.permute.xlu1 %1524  ;;  %v2220_v5 = vld [vmem:[%s4065_s29 + $0x170] sm:$0xff] (%p4895_p3)  }
 0x300   : > { %v1587_v18 = vpop.permute.xlu0 %1586  ;;  %3100 = vst.msk [vmem:[%s4065_s29 + $0x17c] sm:$0xf] %vm1397_vm1, %v1525_v56  ;;  %2014 = sbr.rel (!%p4895_p3) target bundleno = 781 (0x30d), region = 56  ;;  %2221 = vst [vmem:[%s4658_s9 + $0x270] sm:$0xff] (%p4895_p3), %v2220_v5   ;;  %v2280_v56 = vld [vmem:[%s4065_s29 + $0x1e8] sm:$0xff] (%p4895_p3)  }
 0x301   : > { %3131 = vst.msk [vmem:[%s4065_s29 + $0x1f8] sm:$0xf] %vm1397_vm1, %v1587_v18  ;;  %2281 = vst [vmem:[%s4658_s9 + $0x2e8] sm:$0xff] (%p4895_p3), %v2280_v56  }
 0x303   : > { %v1589_v19 = vpop.permute.xlu1 %1588  ;;  %v2284_v18 = vld [vmem:[%s4065_s29 + $0x1f0] sm:$0xff] (%p4895_p3)  }
 0x304   : > { %3132 = vst.msk [vmem:[%s4065_s29 + $0x1fc] sm:$0xf] %vm1397_vm1, %v1589_v19  ;;  %2285 = vst [vmem:[%s4658_s9 + $0x2f0] sm:$0xff] (%p4895_p3), %v2284_v18  }
 0x307   : > { %v2224_v38 = vld [vmem:[%s4065_s29 + $0x178] sm:$0xff]  }
 0x308   : > { %2225 = vst [vmem:[%s4658_s9 + $0x278] sm:$0xff] %v2224_v38  }
 0x30b   : > { %v2288_v19 = vld [vmem:[%s4065_s29 + $0x1f8] sm:$0xff]  }
 0x30c   : > { %2289 = vst [vmem:[%s4658_s9 + $0x2f8] sm:$0xff] %v2288_v19  }
 0x30d PF: > { %s4898_s14 = sld [smem:[#allocation12_spill]]  ;;  %s4901_s18 = smov %s3644_s19 }
 0x30e   : > { %s4899_s21 = sld [smem:[#allocation11_spill]]  ;;  %s4902_s19 = smov %s3648_s20 }
 0x30f   : > { %s4900_s17 = sld [smem:[#allocation13_spill]]  ;;  %s4903_s20 = smov %s3831_s23 }
 0x310   : > { %s4904_s22 = smov %s3664_s24  ;;  %s4906_s24 = smov %s4912_s12 }
 0x313   : > { %s19_s25 = sadd.s32 1, %s4898_s14  }
 0x314   : > { %p16_p6 = scmp.ge.s32.totalorder %s19_s25, 6  }
 0x315   : > { %s4905_s23 = smov %s4900_s17 }
 0x316   :  { %18 = sbr.rel (!%p16_p6) target bundleno = 10 (0xa), region = 137 }
 0x31b   :  { %2837 = vsyncpa [#allocation3], 1 }
 0x31c   :  { %2839 = vsyncpa [#allocation3 + $0x1], 1 }
 0x31d   :  { %2840 = vsyncpa [#allocation5], 1 }

</bundles_post_ra>
